<compile_context>
chip_gen: v5e
topology: v5e:2x2
jax: 0.10.0
libtpu: 0.0.40
codegen_flags: <defaults>
</compile_context>

<pallas_src>
import jax
import jax.numpy as jnp
from jax import lax
from jax.experimental import pallas as pl
from jax.experimental.pallas import tpu as pltpu


def peg_kernel(x_ref, w_ref, b_ref, o_ref, xpad_ref):
    """Depthwise 3x3 conv (+bias, residual folded into center tap) for one image.

    x_ref   : (1, H, W, C)   input image (NHWC block)
    w_ref   : (3, 3, C)      per-channel taps, center tap already includes +1
    b_ref   : (1, 1, C)      bias
    o_ref   : (1, H, W, C)   output
    xpad_ref: (H+2, W+2, C)  VMEM scratch holding the zero-haloed image
    """
    H, W, C = o_ref.shape[1], o_ref.shape[2], o_ref.shape[3]

    # Build the zero halo in VMEM. Re-zero every grid step (cheap, VMEM-only)
    # so correctness does not depend on grid-iteration order / core sharding.
    xpad_ref[...] = jnp.zeros_like(xpad_ref)
    xpad_ref[1:1 + H, 1:1 + W, :] = x_ref[0]

    # Load taps once (avoids 9 tiny re-reads + re-broadcasts inside the loop).
    w = w_ref[...].astype(jnp.float32)                       # (3, 3, C)
    acc = jnp.zeros((H, W, C), jnp.float32)

    # Depthwise 3x3 = 9 shifted multiply-accumulates.
    # Only the 3 dw shifts slice the sublane-tiled W axis (unaligned); the dh
    # shifts slice the untiled leading axis of the per-dw band, which is cheap.
    for dw in range(3):
        xw = xpad_ref[:, dw:dw + W, :].astype(jnp.float32)   # (H+2, W, C)
        for dh in range(3):
            acc = acc + xw[dh:dh + H] * w[dh, dw]

    acc = acc + b_ref[0, 0, :].astype(jnp.float32)
    o_ref[0] = acc.astype(o_ref.dtype)


def peg_forward(x_nchw, weight, bias):
    """x_nchw: (N, C, H, W); weight: (C, 1, 3, 3) PyTorch depthwise layout; bias: (C,)."""
    N, C, H, W = x_nchw.shape

    # Module contract is NCHW; the kernel runs NHWC (channels on lanes).
    x_nhwc = jnp.transpose(x_nchw, (0, 2, 3, 1))                      # (N, H, W, C)

    # Depthwise taps -> (3, 3, C). Fold the residual into the center tap:
    #   conv(x, w) + x  ==  conv(x, w') with w'[1,1,c] = w[1,1,c] + 1
    # This removes the second HBM input stream entirely.
    w_hwc = jnp.transpose(weight[:, 0, :, :], (1, 2, 0))              # (3, 3, C)
    w_hwc = w_hwc.at[1, 1, :].add(jnp.asarray(1.0, w_hwc.dtype))
    b_hwc = bias.reshape(1, 1, C)

    out_nhwc = pl.pallas_call(
        peg_kernel,
        out_shape=jax.ShapeDtypeStruct((N, H, W, C), x_nchw.dtype),
        grid_spec=pltpu.PrefetchScalarGridSpec(
            num_scalar_prefetch=0,
            grid=(N,),
            in_specs=[
                pl.BlockSpec((1, H, W, C), lambda n: (n, 0, 0, 0)),
                pl.BlockSpec((3, 3, C), lambda n: (0, 0, 0)),
                pl.BlockSpec((1, 1, C), lambda n: (0, 0, 0)),
            ],
            out_specs=pl.BlockSpec((1, H, W, C), lambda n: (n, 0, 0, 0)),
            scratch_shapes=[pltpu.VMEM((H + 2, W + 2, C), x_nchw.dtype)],
        ),
        compiler_params=pltpu.CompilerParams(
            dimension_semantics=("parallel",),          # batch shards across TCs
            vmem_limit_bytes=32 * 1024 * 1024),
    )(x_nhwc, w_hwc, b_hwc)

    return jnp.transpose(out_nhwc, (0, 3, 1, 2))                      # back to NCHW


def peg_reference(x_nchw, weight, bias):
    """Pure-JAX reference: depthwise conv (groups=C) + bias + residual, NCHW."""
    C = x_nchw.shape[1]
    y = lax.conv_general_dilated(
        x_nchw, weight,
        window_strides=(1, 1), padding=((1, 1), (1, 1)),
        dimension_numbers=("NCHW", "OIHW", "NCHW"),
        feature_group_count=C)
    return y + bias.reshape(1, C, 1, 1) + x_nchw


if __name__ == "__main__":
    key = jax.random.PRNGKey(0)
    k_x, k_w, k_b = jax.random.split(key, 3)

    # hidden_size = 128 so the channel (lane) dimension is fully dense.
    N, C, H, W = 2, 128, 16, 16
    x = jax.random.normal(k_x, (N, C, H, W), dtype=jnp.float32)
    # Shapes match nn.Conv2d(C, C, 3, padding=1, groups=C): weight (C,1,3,3), bias (C,)
    weight = 0.1 * jax.random.normal(k_w, (C, 1, 3, 3), dtype=jnp.float32)
    bias = 0.1 * jax.random.normal(k_b, (C,), dtype=jnp.float32)

    out = peg_forward(x, weight, bias)
    out = jax.block_until_ready(out)

    ref = peg_reference(x, weight, bias)
    assert out.shape == x.shape
    assert jnp.allclose(out, ref, atol=1e-5, rtol=1e-5), "mismatch vs reference"

    print("KERNEL_OK")
</pallas_src>

<mosaic_0001>
module attributes {stable_mosaic.version = 11 : i64} {
  func.func @peg_kernel(%arg0: i32, %arg1: memref<1x16x16x128xf32, #tpu.memory_space<vmem>>, %arg2: memref<3x3x128xf32, #tpu.memory_space<vmem>>, %arg3: memref<1x1x128xf32, #tpu.memory_space<vmem>>, %arg4: memref<1x16x16x128xf32, #tpu.memory_space<vmem>>, %arg5: memref<18x18x128xf32, #tpu.memory_space<vmem>>) attributes {dimension_semantics = [#tpu.dimension_semantics<parallel>], iteration_bounds = array<i64: 2>, scalar_prefetch = 0 : i64, scratch_operands = 1 : i64, tpu.core_type = #tpu.core_type<tc>, window_params = [{transform_indices = @transform_0, window_bounds = array<i64: 1, 16, 16, 128>}, {pipeline_mode = #tpu.pipeline_mode<synchronous>, transform_indices = @transform_1, window_bounds = array<i64: 3, 3, 128>}, {pipeline_mode = #tpu.pipeline_mode<synchronous>, transform_indices = @transform_2, window_bounds = array<i64: 1, 1, 128>}, {transform_indices = @transform_3, window_bounds = array<i64: 1, 16, 16, 128>}]} {
    %cst = arith.constant 0.000000e+00 : f32
    %0 = vector.broadcast %cst : f32 to vector<18x18x128xf32>
    %c0 = arith.constant 0 : index
    %c0_0 = arith.constant 0 : index
    %c0_1 = arith.constant 0 : index
    %1 = vector.load %arg5[%c0, %c0_0, %c0_1] : memref<18x18x128xf32, #tpu.memory_space<vmem>>, vector<18x18x128xf32>
    tpu.vector_store %arg5[%c0, %c0_0, %c0_1], %0 {strides = array<i32>} : memref<18x18x128xf32, #tpu.memory_space<vmem>>, vector<18x18x128xf32>,
    %c0_2 = arith.constant 0 : index
    %c0_3 = arith.constant 0 : index
    %c0_4 = arith.constant 0 : index
    %c0_5 = arith.constant 0 : index
    %2 = vector.load %arg1[%c0_2, %c0_3, %c0_4, %c0_5] : memref<1x16x16x128xf32, #tpu.memory_space<vmem>>, vector<1x16x16x128xf32>
    %3 = vector.shape_cast %2 : vector<1x16x16x128xf32> to vector<16x16x128xf32>
    %c1 = arith.constant 1 : index
    %c1_6 = arith.constant 1 : index
    %c0_7 = arith.constant 0 : index
    %4 = vector.load %arg5[%c1, %c1_6, %c0_7] : memref<18x18x128xf32, #tpu.memory_space<vmem>>, vector<16x16x128xf32>
    tpu.vector_store %arg5[%c1, %c1_6, %c0_7], %3 {strides = array<i32>} : memref<18x18x128xf32, #tpu.memory_space<vmem>>, vector<16x16x128xf32>,
    %c0_8 = arith.constant 0 : index
    %c0_9 = arith.constant 0 : index
    %c0_10 = arith.constant 0 : index
    %5 = vector.load %arg2[%c0_8, %c0_9, %c0_10] : memref<3x3x128xf32, #tpu.memory_space<vmem>>, vector<3x3x128xf32>
    %cst_11 = arith.constant 0.000000e+00 : f32
    %6 = vector.broadcast %cst_11 : f32 to vector<16x16x128xf32>
    %c0_12 = arith.constant 0 : index
    %c0_13 = arith.constant 0 : index
    %c0_14 = arith.constant 0 : index
    %7 = vector.load %arg5[%c0_12, %c0_13, %c0_14] : memref<18x18x128xf32, #tpu.memory_space<vmem>>, vector<18x16x128xf32>
    %8 = vector.extract_strided_slice %7 {offsets = [0, 0, 0], sizes = [16, 16, 128], strides = [1, 1, 1]} : vector<18x16x128xf32> to vector<16x16x128xf32>
    %9 = vector.extract_strided_slice %5 {offsets = [0, 0, 0], sizes = [1, 1, 128], strides = [1, 1, 1]} : vector<3x3x128xf32> to vector<1x1x128xf32>
    %10 = vector.shape_cast %9 : vector<1x1x128xf32> to vector<128xf32>
    %11 = vector.shape_cast %10 : vector<128xf32> to vector<1x1x128xf32>
    %12 = vector.broadcast %11 : vector<1x1x128xf32> to vector<16x16x128xf32>
    %13 = arith.mulf %8, %12 : vector<16x16x128xf32>
    %14 = arith.addf %6, %13 : vector<16x16x128xf32>
    %15 = vector.extract_strided_slice %7 {offsets = [1, 0, 0], sizes = [16, 16, 128], strides = [1, 1, 1]} : vector<18x16x128xf32> to vector<16x16x128xf32>
    %16 = vector.extract_strided_slice %5 {offsets = [1, 0, 0], sizes = [1, 1, 128], strides = [1, 1, 1]} : vector<3x3x128xf32> to vector<1x1x128xf32>
    %17 = vector.shape_cast %16 : vector<1x1x128xf32> to vector<128xf32>
    %18 = vector.shape_cast %17 : vector<128xf32> to vector<1x1x128xf32>
    %19 = vector.broadcast %18 : vector<1x1x128xf32> to vector<16x16x128xf32>
    %20 = arith.mulf %15, %19 : vector<16x16x128xf32>
    %21 = arith.addf %14, %20 : vector<16x16x128xf32>
    %22 = vector.extract_strided_slice %7 {offsets = [2, 0, 0], sizes = [16, 16, 128], strides = [1, 1, 1]} : vector<18x16x128xf32> to vector<16x16x128xf32>
    %23 = vector.extract_strided_slice %5 {offsets = [2, 0, 0], sizes = [1, 1, 128], strides = [1, 1, 1]} : vector<3x3x128xf32> to vector<1x1x128xf32>
    %24 = vector.shape_cast %23 : vector<1x1x128xf32> to vector<128xf32>
    %25 = vector.shape_cast %24 : vector<128xf32> to vector<1x1x128xf32>
    %26 = vector.broadcast %25 : vector<1x1x128xf32> to vector<16x16x128xf32>
    %27 = arith.mulf %22, %26 : vector<16x16x128xf32>
    %28 = arith.addf %21, %27 : vector<16x16x128xf32>
    %c0_15 = arith.constant 0 : index
    %c1_16 = arith.constant 1 : index
    %c0_17 = arith.constant 0 : index
    %29 = vector.load %arg5[%c0_15, %c1_16, %c0_17] : memref<18x18x128xf32, #tpu.memory_space<vmem>>, vector<18x16x128xf32>
    %30 = vector.extract_strided_slice %29 {offsets = [0, 0, 0], sizes = [16, 16, 128], strides = [1, 1, 1]} : vector<18x16x128xf32> to vector<16x16x128xf32>
    %31 = vector.extract_strided_slice %5 {offsets = [0, 1, 0], sizes = [1, 1, 128], strides = [1, 1, 1]} : vector<3x3x128xf32> to vector<1x1x128xf32>
    %32 = vector.shape_cast %31 : vector<1x1x128xf32> to vector<128xf32>
    %33 = vector.shape_cast %32 : vector<128xf32> to vector<1x1x128xf32>
    %34 = vector.broadcast %33 : vector<1x1x128xf32> to vector<16x16x128xf32>
    %35 = arith.mulf %30, %34 : vector<16x16x128xf32>
    %36 = arith.addf %28, %35 : vector<16x16x128xf32>
    %37 = vector.extract_strided_slice %29 {offsets = [1, 0, 0], sizes = [16, 16, 128], strides = [1, 1, 1]} : vector<18x16x128xf32> to vector<16x16x128xf32>
    %38 = vector.extract_strided_slice %5 {offsets = [1, 1, 0], sizes = [1, 1, 128], strides = [1, 1, 1]} : vector<3x3x128xf32> to vector<1x1x128xf32>
    %39 = vector.shape_cast %38 : vector<1x1x128xf32> to vector<128xf32>
    %40 = vector.shape_cast %39 : vector<128xf32> to vector<1x1x128xf32>
    %41 = vector.broadcast %40 : vector<1x1x128xf32> to vector<16x16x128xf32>
    %42 = arith.mulf %37, %41 : vector<16x16x128xf32>
    %43 = arith.addf %36, %42 : vector<16x16x128xf32>
    %44 = vector.extract_strided_slice %29 {offsets = [2, 0, 0], sizes = [16, 16, 128], strides = [1, 1, 1]} : vector<18x16x128xf32> to vector<16x16x128xf32>
    %45 = vector.extract_strided_slice %5 {offsets = [2, 1, 0], sizes = [1, 1, 128], strides = [1, 1, 1]} : vector<3x3x128xf32> to vector<1x1x128xf32>
    %46 = vector.shape_cast %45 : vector<1x1x128xf32> to vector<128xf32>
    %47 = vector.shape_cast %46 : vector<128xf32> to vector<1x1x128xf32>
    %48 = vector.broadcast %47 : vector<1x1x128xf32> to vector<16x16x128xf32>
    %49 = arith.mulf %44, %48 : vector<16x16x128xf32>
    %50 = arith.addf %43, %49 : vector<16x16x128xf32>
    %c0_18 = arith.constant 0 : index
    %c2 = arith.constant 2 : index
    %c0_19 = arith.constant 0 : index
    %51 = vector.load %arg5[%c0_18, %c2, %c0_19] : memref<18x18x128xf32, #tpu.memory_space<vmem>>, vector<18x16x128xf32>
    %52 = vector.extract_strided_slice %51 {offsets = [0, 0, 0], sizes = [16, 16, 128], strides = [1, 1, 1]} : vector<18x16x128xf32> to vector<16x16x128xf32>
    %53 = vector.extract_strided_slice %5 {offsets = [0, 2, 0], sizes = [1, 1, 128], strides = [1, 1, 1]} : vector<3x3x128xf32> to vector<1x1x128xf32>
    %54 = vector.shape_cast %53 : vector<1x1x128xf32> to vector<128xf32>
    %55 = vector.shape_cast %54 : vector<128xf32> to vector<1x1x128xf32>
    %56 = vector.broadcast %55 : vector<1x1x128xf32> to vector<16x16x128xf32>
    %57 = arith.mulf %52, %56 : vector<16x16x128xf32>
    %58 = arith.addf %50, %57 : vector<16x16x128xf32>
    %59 = vector.extract_strided_slice %51 {offsets = [1, 0, 0], sizes = [16, 16, 128], strides = [1, 1, 1]} : vector<18x16x128xf32> to vector<16x16x128xf32>
    %60 = vector.extract_strided_slice %5 {offsets = [1, 2, 0], sizes = [1, 1, 128], strides = [1, 1, 1]} : vector<3x3x128xf32> to vector<1x1x128xf32>
    %61 = vector.shape_cast %60 : vector<1x1x128xf32> to vector<128xf32>
    %62 = vector.shape_cast %61 : vector<128xf32> to vector<1x1x128xf32>
    %63 = vector.broadcast %62 : vector<1x1x128xf32> to vector<16x16x128xf32>
    %64 = arith.mulf %59, %63 : vector<16x16x128xf32>
    %65 = arith.addf %58, %64 : vector<16x16x128xf32>
    %66 = vector.extract_strided_slice %51 {offsets = [2, 0, 0], sizes = [16, 16, 128], strides = [1, 1, 1]} : vector<18x16x128xf32> to vector<16x16x128xf32>
    %67 = vector.extract_strided_slice %5 {offsets = [2, 2, 0], sizes = [1, 1, 128], strides = [1, 1, 1]} : vector<3x3x128xf32> to vector<1x1x128xf32>
    %68 = vector.shape_cast %67 : vector<1x1x128xf32> to vector<128xf32>
    %69 = vector.shape_cast %68 : vector<128xf32> to vector<1x1x128xf32>
    %70 = vector.broadcast %69 : vector<1x1x128xf32> to vector<16x16x128xf32>
    %71 = arith.mulf %66, %70 : vector<16x16x128xf32>
    %72 = arith.addf %65, %71 : vector<16x16x128xf32>
    %c0_20 = arith.constant 0 : index
    %c0_21 = arith.constant 0 : index
    %c0_22 = arith.constant 0 : index
    %73 = vector.load %arg3[%c0_20, %c0_21, %c0_22] : memref<1x1x128xf32, #tpu.memory_space<vmem>>, vector<1x1x128xf32>
    %74 = vector.shape_cast %73 : vector<1x1x128xf32> to vector<128xf32>
    %75 = vector.shape_cast %74 : vector<128xf32> to vector<1x1x128xf32>
    %76 = vector.broadcast %75 : vector<1x1x128xf32> to vector<16x16x128xf32>
    %77 = arith.addf %72, %76 : vector<16x16x128xf32>
    %c0_23 = arith.constant 0 : index
    %c0_24 = arith.constant 0 : index
    %c0_25 = arith.constant 0 : index
    %c0_26 = arith.constant 0 : index
    %78 = vector.load %arg4[%c0_23, %c0_24, %c0_25, %c0_26] : memref<1x16x16x128xf32, #tpu.memory_space<vmem>>, vector<1x16x16x128xf32>
    %79 = vector.shape_cast %78 : vector<1x16x16x128xf32> to vector<16x16x128xf32>
    %80 = vector.shape_cast %77 : vector<16x16x128xf32> to vector<1x16x16x128xf32>
    tpu.vector_store %arg4[%c0_23, %c0_24, %c0_25, %c0_26], %80 {strides = array<i32>} : memref<1x16x16x128xf32, #tpu.memory_space<vmem>>, vector<1x16x16x128xf32>,
    return
  }
  func.func @transform_0(%arg0: i32) -> (i32, i32, i32, i32) {
    %c0_i32 = arith.constant 0 : i32
    %c0_i32_0 = arith.constant 0 : i32
    %c0_i32_1 = arith.constant 0 : i32
    %c0_i32_2 = arith.constant 0 : i32
    return %arg0, %c0_i32, %c0_i32_0, %c0_i32_1 : i32, i32, i32, i32
  }
  func.func @transform_1(%arg0: i32) -> (i32, i32, i32) {
    %c0_i32 = arith.constant 0 : i32
    %c0_i32_0 = arith.constant 0 : i32
    %c0_i32_1 = arith.constant 0 : i32
    %c0_i32_2 = arith.constant 0 : i32
    return %c0_i32, %c0_i32_0, %c0_i32_1 : i32, i32, i32
  }
  func.func @transform_2(%arg0: i32) -> (i32, i32, i32) {
    %c0_i32 = arith.constant 0 : i32
    %c0_i32_0 = arith.constant 0 : i32
    %c0_i32_1 = arith.constant 0 : i32
    %c0_i32_2 = arith.constant 0 : i32
    return %c0_i32, %c0_i32_0, %c0_i32_1 : i32, i32, i32
  }
  func.func @transform_3(%arg0: i32) -> (i32, i32, i32, i32) {
    %c0_i32 = arith.constant 0 : i32
    %c0_i32_0 = arith.constant 0 : i32
    %c0_i32_1 = arith.constant 0 : i32
    %c0_i32_2 = arith.constant 0 : i32
    return %arg0, %c0_i32, %c0_i32_0, %c0_i32_1 : i32, i32, i32, i32
  }
}

</mosaic_0001>

<bundles_post_ra>
// kernel: tpu_custom_call.1
= control target key start
LH: loop header
LB: loop body
LE: loop exit
PB: predicated region body
PF: predicated region fallthrough
CT: control target
= control target key end

     0   :  { %8 = vsyncpa [#allocation4], 0  ;;  %s2497_s0 = inlined_call_operand.hbm [shape: f32[2,16,16,128], index: 0, kind: input, shape index: {}]   ;;  %s2498_s1 = inlined_call_operand.hbm [shape: f32[3,3,128], index: 1, kind: input, shape index: {}]   ;;  %s2499_s2 = inlined_call_operand.vmem [shape: f32[1,1,128], index: 2, kind: input, shape index: {}]   ;;  %s2500_s3 = inlined_call_operand.hbm [shape: f32[2,16,16,128], index: 3, kind: output, shape index: {}]  }
   0x1   :  { %10 = vsyncpa [#allocation4 + $0x1], 0 }
   0x2   :  { %11 = vsyncpa [#allocation7], 0 }
   0x3   :  { %12 = vsyncpa [#allocation5], 0 }
   0x4   :  { %14 = vsyncpa [#allocation5 + $0x1], 0  ;;  %s1435_s12 = smov 0   ;;  %s1437_s13 = smov 0  }
   0x5   :  { %s1439_s14 = smov 0   ;;  %s1441_s15 = smov 0  }
   0x6 LB: > { %s1456_s16 = sadd.s32 4294967295, %s1405_s15   ;;  %s1190_s17 = sadd.s32 4294967294, %s1405_s15   ;;  %s1405_s15 = sphi %s1441_s15, %s2549_s15   ;;  %s1401_s14 = sphi %s1439_s14, %s2548_s14   ;;  %s1397_s13 = sphi %s1437_s13, %s2547_s13   ;;  %s1393_s12 = sphi %s1435_s12, %s2546_s12  }
   0x7   : > { %p40_p0 = scmp.ne.s32.totalorder %s1397_s13, %s1393_s12  ;;  %p41_p1 = scmp.eq.s32.totalorder %s1456_s16, 0 }
   0x8   : > { %p106_p2 = scmp.eq.s32.totalorder %s1456_s16, 1  ;;  %p112_p3 = scmp.eq.s32.totalorder %s1190_s17, 1 }
   0x9   : > { %p1465_p4 = por %p41_p1, %p40_p0  ;;  %p1191_p5 = scmp.ge.s32.totalorder %s1405_s15, 1 }
   0xa   : > { %p1470_p6 = por %p112_p3, %p40_p0  ;;  %p119_p7 = scmp.lt.s32.totalorder %s1405_s15, 3 }
   0xb   : > { %s130_s22 = sshll.u32 %s2498_s1, 4  ;;  %s1407_s24 = smov [#allocation6]   ;;  %s131_s22 = int_to_ptr.hbm [resolvable:$true] %s130_s22 }
   0xc   : > { %p1478_p8 = pnand %p1191_p5, %p119_p7  ;;  %s132_s25 = sshll.u32 %s1407_s24, 4  ;;  %s133_s25 = int_to_ptr.vmem [resolvable:$true] %s132_s25 }
   0xd   : > { %s1488_s26 = sadd.s32 1, %s1405_s15   ;;  %s1408_s27 = smov 64  }
   0xe   : > { %p1216_p9 = pneg %p1478_p8  ;;  %s1409_s28 = smov 4  }
   0xf   : > { %s24_s29 = ssub.s32 %s1405_s15, %s1488_s26  ;;  %s27_s30 = sadd.s32 1, %s1401_s14 }
  0x10   : > { %p1217_p10 = pnand %p1216_p9, %p41_p1  ;;  %p25_p12 = scmp.eq.s32.totalorder %s24_s29, 0 }
  0x11   : > { %p34_p13 = scmp.ne.s32.totalorder %s1401_s14, %s1397_s13  ;;  %p35_p0 = scmp.eq.s32.totalorder %s1405_s15, 0 }
  0x12   : > { %1219 = dma.hbm_to_vmem [thread:$0]  (!%p1217_p10), %s131_s22, 192, %s133_s25, [#allocation7], %s1408_s27, %s1408_s27, %s1409_s28  }
  0x13   : > { %p1229_p3 = scmp.lt.s32.totalorder %s1405_s15, 2  ;;  %p36_p5 = por %p35_p0, %p34_p13 }
  0x14   : > { %s1498_s4 = scalar_select %p25_p12, %s1401_s14, %s27_s30  }
  0x15   : > { %p1502_p7 = por %p106_p2, %p34_p13  ;;  %s149_s6 = sand.u32 1, %s1401_s14  }
  0x16   : > { %s1206_s7 = sshll.u32 %s1405_s15, 8  ;;  %s1194_s8 = sshll.u32 %s149_s6, 8 }
  0x17   : > { %s158_s11 = scalar_lea.hbm %s2497_s0, %s1206_s7  ;;  %s153_s20 = scalar_lea.vmem [#allocation3], %s1194_s8 }
  0x18   : > { %s159_s17 = sshll.u32 %s158_s11, 4  ;;  %s161_s21 = sshll.u32 %s153_s20, 4  ;;  %s160_s17 = int_to_ptr.hbm [resolvable:$true] %s159_s17  ;;  %s162_s21 = int_to_ptr.vmem [resolvable:$true] %s161_s21 }
  0x19   : > { %p1513_p9 = pnand %p1229_p3, %p36_p5  ;;  %s150_s24 = scalar_lea.sflag [#allocation4], %s149_s6 }
  0x1a   : > { %s1305_s25 = sshra.s32 %s160_s17, 4  ;;  %s1312_s30 = scalar_lea.hbm %s2497_s0, 512  ;;  %s1306_s25 = int_to_ptr.hbm [resolvable:$true] %s1305_s25 }
  0x1b   : > { %s1307_s27 = scalar_lea.hbm %s1306_s25, 256  ;;  %p1309_p10 = pneg %p1513_p9 }
  0x1c   : > { %p1308_p2 = scmp.ne.s32.totalorder %s1306_s25, %s1307_s27  ;;  %p1313_p0 = scmp.lt.s32.totalorder %s1306_s25, %s2497_s0 }
  0x1d   : > { %p1314_p3 = scmp.lt.s32.totalorder %s1312_s30, %s1307_s27 }
  0x1e   : > { %p1310_p12 = pnand %p1309_p10, %p1308_p2 }
  0x1f   : > { %p1315_p5 = por %p1314_p3, %p1313_p0 }
  0x20   : > { %p1311_p13 = pneg %p1310_p12 }
  0x22   : > { %p1316_p11 = pnand %p1315_p5, %p1311_p13 }
  0x24   : > { %1319 = shalt.err (!%p1316_p11)
}
  0x25   : > { %s1410_s6 = smov 128   ;;  %s1411_s9 = smov 8  }
  0x26   : > { %1223 = dma.hbm_to_vmem [thread:$0]  (!%p1513_p9), %s160_s17, 4096, %s162_s21, %s150_s24, %s1410_s6, %s1410_s6, %s1411_s9  }
  0x27   : > { %173 = sbr.rel (%p1478_p8) target bundleno = 274 (0x112), region = 32 }
  0x2c   : > { %s1530_s10 = sand.u32 1, %s1397_s13  }
  0x2d   : > { %s1198_s11 = sshll.u32 %s1530_s10, 8  ;;  %s176_s20 = scalar_lea.sflag [#allocation4], %s1530_s10 }
  0x2e   : > { %s1536_s25 = scalar_lea.vmem [#allocation3], %s1198_s11 }
  0x2f   : > { %1380 = dma.done.wait (%p1465_p4), %s176_s20, 4096  }
  0x30   : > { %1382 = vsyncadd (%p1465_p4), %s176_s20, 4294963200 }
  0x31   : > { %1384 = dma.done.wait (%p41_p1), [#allocation7], 192  }
  0x32   : > { %1386 = vsyncadd (%p41_p1), [#allocation7], 4294967104  ;;  %v1412_v0 = vmov 0.0   ;;  %v262_v1 = vld [vmem:[%s1536_s25] sm:$0xff]  ;;  %v263_v2 = vld [vmem:[%s1536_s25 + $0x8] sm:$0xff]  ;;  %s1864_s17 = scalar_lea.vmem [#allocation8], %s1198_s11 }
  0x33   : > { %211 = vst [vmem:[#allocation2 + $0x18] sm:$0xff] %v1412_v0  ;;  %v264_v3 = vld [vmem:[%s1536_s25 + $0x10] sm:$0xff]  ;;  %v327_v4 = vld [vmem:[#allocation6] sm:$0x7]  ;;  %v328_v5 = vld [vmem:[#allocation6 + $0x4] sm:$0x7] }
  0x34   : > { %208 = vst [vmem:[#allocation2] sm:$0xff] %v1412_v0  ;;  %v265_v6 = vld [vmem:[%s1536_s25 + $0x18] sm:$0xff]  ;;  %v1551_v7 = vld [vmem:[%s1536_s25 + $0x20] sm:$0xff]  ;;  %v329_v8 = vld [vmem:[#allocation6 + $0x8] sm:$0x7]  ;;  %v1553_v9 = vperm.slane %v327_v4, 0 }
  0x35   : > { %209 = vst [vmem:[#allocation2 + $0x8] sm:$0xff] %v1412_v0  ;;  %v1556_v10 = vld [vmem:[%s1536_s25 + $0x28] sm:$0xff]  ;;  %v1559_v11 = vld [vmem:[%s1536_s25 + $0x30] sm:$0xff]  ;;  %v1561_v13 = vperm.slane %v328_v5, 0  ;;  %v1563_v14 = vperm.slane %v327_v4, 1  ;;  %v1565_v15 = vperm.slane %v328_v5, 1 }
  0x36   : > { %210 = vst [vmem:[#allocation2 + $0x10] sm:$0x3] %v1412_v0  ;;  %v1567_v16 = vperm.slane %v329_v8, 1  ;;  %v367_v18 = vmul.f32 0.0, %v1553_v9  ;;  %v1570_v19 = vperm.slane %v329_v8, 0  ;;  %v1572_v20 = vperm.slane %v327_v4, 2 }
  0x37   : > { %212 = vst [vmem:[#allocation2 + $0x20] sm:$0xff] %v1412_v0  ;;  %v1574_v21 = vperm.slane %v328_v5, 2  ;;  %v1578_v24 = vld [vmem:[%s1536_s25 + $0x38] sm:$0xff]  ;;  %v1584_v26 = vmul.f32 %v1565_v15, %v262_v1  ;;  %v1589_v28 = vperm.slane %v329_v8, 2  ;;  %v1593_v29 = vld [vmem:[%s1536_s25 + $0x40] sm:$0xff]  ;;  %v1602_v32 = vmul.f32 %v1565_v15, %v263_v2  ;;  %v1609_v34 = vld [vmem:[%s1536_s25 + $0x48] sm:$0xff] }
  0x38   : > { %213 = vst [vmem:[#allocation2 + $0x28] sm:$0x3] %v1412_v0  ;;  %v1587_v27 = vmul.f32 %v1567_v16, %v264_v3  ;;  %v1605_v33 = vmul.f32 %v1567_v16, %v265_v6  ;;  %v1615_v36 = vmul.f32 %v1563_v14, %v262_v1  ;;  %v1618_v37 = vmul.f32 %v1565_v15, %v264_v3  ;;  %v1626_v39 = vld [vmem:[%s1536_s25 + $0x50] sm:$0xff]  ;;  %v1643_v45 = vld [vmem:[%s1536_s25 + $0x58] sm:$0xff]  ;;  %v1646_v46 = vld [vmem:[%s1536_s25 + $0x60] sm:$0xff]  ;;  %s1207_s24 = sshll.u32 %s1456_s16, 8 }
  0x39   : > { %214 = vst [vmem:[#allocation2 + $0x30] sm:$0xff] %v1412_v0  ;;  %v1622_v38 = vmul.f32 %v1567_v16, %v1551_v7  ;;  %v1629_v41 = vmul.f32 %v1563_v14, %v263_v2  ;;  %v1632_v42 = vmul.f32 %v1565_v15, %v265_v6  ;;  %v1636_v43 = vmul.f32 %v1567_v16, %v1556_v10  ;;  %v1660_v52 = vld [vmem:[%s1536_s25 + $0x68] sm:$0xff]  ;;  %v1676_v59 = vld [vmem:[%s1536_s25 + $0x70] sm:$0xff]  ;;  %s1103_s29 = scalar_lea.hbm %s2500_s3, %s1207_s24  ;;  %s1104_s16 = sshll.u32 %s1864_s17, 4  ;;  %s1105_s16 = int_to_ptr.vmem [resolvable:$true] %s1104_s16 }
  0x3a   : > { %215 = vst [vmem:[#allocation2 + $0x38] sm:$0xff] %v1412_v0  ;;  %v1639_v44 = vmul.f32 %v1563_v14, %v264_v3  ;;  %v1652_v50 = vmul.f32 %v1565_v15, %v1551_v7  ;;  %v1656_v51 = vmul.f32 %v1567_v16, %v1559_v11  ;;  %v1664_v56 = vmul.f32 %v1563_v14, %v265_v6  ;;  %s1106_s30 = sshll.u32 %s1103_s29, 4  ;;  %s1092_s7 = scalar_lea.sflag [#allocation5], %s1530_s10  ;;  %s1107_s30 = int_to_ptr.hbm [resolvable:$true] %s1106_s30 }
  0x3b   : > { %216 = vst [vmem:[#allocation2 + $0x40] sm:$0x3] %v1412_v0  ;;  %v1668_v57 = vmul.f32 %v1565_v15, %v1556_v10  ;;  %v1672_v58 = vmul.f32 %v1567_v16, %v1578_v24  ;;  %s1349_s8 = sshra.s32 %s1107_s30, 4  ;;  %s1355_s20 = scalar_lea.hbm %s2500_s3, 512  ;;  %s1350_s8 = int_to_ptr.hbm [resolvable:$true] %s1349_s8 }
  0x3c   : > { %217 = vst [vmem:[#allocation2 + $0x48] sm:$0xff] %v1412_v0  ;;  %v561_v12 = vld [vmem:[#allocation2 + $0x1] sm:$0xff]  ;;  %s1351_s6 = scalar_lea.hbm %s1350_s8, 256  ;;  %p1356_p11 = scmp.lt.s32.totalorder %s1350_s8, %s2500_s3 }
  0x3d   : > { %218 = vst [vmem:[#allocation2 + $0x50] sm:$0xff] %v1412_v0  ;;  %v792_v17 = vld [vmem:[#allocation2 + $0x2] sm:$0xff]  ;;  %v793_v23 = vld [vmem:[#allocation2 + $0xa] sm:$0xff]  ;;  %v1581_v25 = vmul.f32 %v1563_v14, %v561_v12  ;;  %p1352_p1 = scmp.ne.s32.totalorder %s1350_s8, %s1351_s6  ;;  %p1357_p9 = scmp.lt.s32.totalorder %s1355_s20, %s1351_s6 }
  0x3e   : > { %219 = vst [vmem:[#allocation2 + $0x58] sm:$0x3] %v1412_v0  ;;  %v562_v22 = vld [vmem:[#allocation2 + $0x9] sm:$0xff]  ;;  %v1596_v30 = vmul.f32 %v1572_v20, %v792_v17  ;;  %v1612_v35 = vmul.f32 %v1572_v20, %v793_v23 }
  0x3f   : > { %220 = vst [vmem:[#allocation2 + $0x60] sm:$0xff] %v1412_v0  ;;  %v1599_v31 = vmul.f32 %v1563_v14, %v562_v22  ;;  %v1702_v12 = vld [vmem:[%s1536_s25 + $0x78] sm:$0xff]  ;;  %p1353_p4 = pnand %p1352_p1, %p1502_p7  ;;  %p1358_p2 = por %p1357_p9, %p1356_p11 }
  0x40   : > { %221 = vst [vmem:[#allocation2 + $0x68] sm:$0xff] %v1412_v0 }
  0x41   : > { %222 = vst [vmem:[#allocation2 + $0x70] sm:$0x3] %v1412_v0  ;;  %p1354_p8 = pneg %p1353_p4 }
  0x42   : > { %223 = vst [vmem:[#allocation2 + $0x78] sm:$0xff] %v1412_v0 }
  0x43   : > { %224 = vst [vmem:[#allocation2 + $0x80] sm:$0xff] %v1412_v0  ;;  %p1359_p10 = pnand %p1358_p2, %p1354_p8 }
  0x44   : > { %225 = vst [vmem:[#allocation2 + $0x88] sm:$0x3] %v1412_v0 }
  0x45   : > { %226 = vst [vmem:[#allocation2 + $0x90] sm:$0xff] %v1412_v0 }
  0x46   : > { %227 = vst [vmem:[#allocation2 + $0x98] sm:$0xff] %v1412_v0 }
  0x47   : > { %228 = vst [vmem:[#allocation2 + $0xa0] sm:$0x3] %v1412_v0 }
  0x48   : > { %229 = vst [vmem:[#allocation2 + $0xa8] sm:$0xff] %v1412_v0 }
  0x49   : > { %230 = vst [vmem:[#allocation2 + $0xb0] sm:$0xff] %v1412_v0 }
  0x4a   : > { %231 = vst [vmem:[#allocation2 + $0xb8] sm:$0x3] %v1412_v0 }
  0x4b   : > { %232 = vst [vmem:[#allocation2 + $0xc0] sm:$0xff] %v1412_v0 }
  0x4c   : > { %233 = vst [vmem:[#allocation2 + $0xc8] sm:$0xff] %v1412_v0 }
  0x4d   : > { %234 = vst [vmem:[#allocation2 + $0xd0] sm:$0x3] %v1412_v0 }
  0x4e   : > { %235 = vst [vmem:[#allocation2 + $0xd8] sm:$0xff] %v1412_v0 }
  0x4f   : > { %236 = vst [vmem:[#allocation2 + $0xe0] sm:$0xff] %v1412_v0 }
  0x50   : > { %237 = vst [vmem:[#allocation2 + $0xe8] sm:$0x3] %v1412_v0 }
  0x51   : > { %238 = vst [vmem:[#allocation2 + $0xf0] sm:$0xff] %v1412_v0 }
  0x52   : > { %239 = vst [vmem:[#allocation2 + $0xf8] sm:$0xff] %v1412_v0 }
  0x53   : > { %240 = vst [vmem:[#allocation2 + $0x100] sm:$0x3] %v1412_v0 }
  0x54   : > { %241 = vst [vmem:[#allocation2 + $0x108] sm:$0xff] %v1412_v0 }
  0x55   : > { %242 = vst [vmem:[#allocation2 + $0x110] sm:$0xff] %v1412_v0 }
  0x56   : > { %243 = vst [vmem:[#allocation2 + $0x118] sm:$0x3] %v1412_v0 }
  0x57   : > { %244 = vst [vmem:[#allocation2 + $0x120] sm:$0xff] %v1412_v0 }
  0x58   : > { %245 = vst [vmem:[#allocation2 + $0x128] sm:$0xff] %v1412_v0 }
  0x59   : > { %246 = vst [vmem:[#allocation2 + $0x130] sm:$0x3] %v1412_v0 }
  0x5a   : > { %247 = vst [vmem:[#allocation2 + $0x138] sm:$0xff] %v1412_v0 }
  0x5b   : > { %248 = vst [vmem:[#allocation2 + $0x140] sm:$0xff] %v1412_v0 }
  0x5c   : > { %249 = vst [vmem:[#allocation2 + $0x148] sm:$0x3] %v1412_v0 }
  0x5d   : > { %250 = vst [vmem:[#allocation2 + $0x150] sm:$0xff] %v1412_v0 }
  0x5e   : > { %251 = vst [vmem:[#allocation2 + $0x158] sm:$0xff] %v1412_v0 }
  0x5f   : > { %252 = vst [vmem:[#allocation2 + $0x160] sm:$0x3] %v1412_v0 }
  0x60   : > { %253 = vst [vmem:[#allocation2 + $0x168] sm:$0xff] %v1412_v0 }
  0x61   : > { %254 = vst [vmem:[#allocation2 + $0x170] sm:$0xff] %v1412_v0 }
  0x62   : > { %255 = vst [vmem:[#allocation2 + $0x178] sm:$0x3] %v1412_v0 }
  0x63   : > { %256 = vst [vmem:[#allocation2 + $0x180] sm:$0xff] %v1412_v0 }
  0x64   : > { %257 = vst [vmem:[#allocation2 + $0x188] sm:$0xff] %v1412_v0 }
  0x65   : > { %258 = vst [vmem:[#allocation2 + $0x190] sm:$0x3] %v1412_v0 }
  0x66   : > { %259 = vst [vmem:[#allocation2 + $0x198] sm:$0xff] %v1412_v0 }
  0x67   : > { %260 = vst [vmem:[#allocation2 + $0x1a0] sm:$0xff] %v1412_v0 }
  0x68   : > { %261 = vst [vmem:[#allocation2 + $0x1a8] sm:$0x3] %v1412_v0 }
  0x69   : > { %295 = vst [vmem:[#allocation2 + $0x19] sm:$0xff] %v262_v1  ;;  %v1684_v1 = vmul.f32 %v1563_v14, %v1551_v7 }
  0x6a   : > { %296 = vst [vmem:[#allocation2 + $0x21] sm:$0xff] %v263_v2 }
  0x6b   : > { %2525 = vst [vmem:[#allocation12_spill] sm:$0xff] %v1559_v11 }
  0x6c   : > { %297 = vst [vmem:[#allocation2 + $0x31] sm:$0xff] %v264_v3 }
  0x6d   : > { %298 = vst [vmem:[#allocation2 + $0x39] sm:$0xff] %v265_v6 }
  0x6e   : > { %299 = vst [vmem:[#allocation2 + $0x49] sm:$0xff] %v1551_v7  ;;  %v1698_v7 = vmul.f32 %v1565_v15, %v1559_v11 }
  0x6f   : > { %300 = vst [vmem:[#allocation2 + $0x51] sm:$0xff] %v1556_v10 }
  0x70   : > { %301 = vst [vmem:[#allocation2 + $0x61] sm:$0xff] %v1559_v11  ;;  %v332_v40 = vld [vmem:[#allocation2 + $0x18] sm:$0xff] }
  0x71   : > { %302 = vst [vmem:[#allocation2 + $0x69] sm:$0xff] %v1578_v24  ;;  %v432_v47 = vmul.f32 %v1561_v13, %v332_v40  ;;  %v333_v48 = vld [vmem:[#allocation2 + $0x20] sm:$0xff]  ;;  %v369_v49 = vmul.f32 %v1553_v9, %v332_v40 }
  0x72   : > { %2526 = vst [vmem:[#allocation13_spill] sm:$0xff] %v1626_v39  ;;  %v794_v54 = vld [vmem:[#allocation2 + $0x1a] sm:$0xff]  ;;  %v433_v55 = vmul.f32 %v1561_v13, %v333_v48  ;;  %v795_v63 = vld [vmem:[#allocation2 + $0x22] sm:$0xff]  ;;  %v370_v8 = vmul.f32 %v1553_v9, %v333_v48 }
  0x73   : > { %303 = vst [vmem:[#allocation2 + $0x79] sm:$0xff] %v1593_v29  ;;  %v334_v53 = vld [vmem:[#allocation2 + $0x30] sm:$0xff]  ;;  %v464_v60 = vadd.f32 %v432_v47, %v367_v18 }
  0x74   : > { %2527 = vst [vmem:[#allocation14_spill] sm:$0xff] %v1643_v45  ;;  %v497_v61 = vmul.f32 %v1570_v19, %v334_v53  ;;  %v1679_v62 = vld [vmem:[#allocation2 + $0x38] sm:$0xff]  ;;  %v434_v0 = vmul.f32 %v1561_v13, %v334_v53  ;;  %v465_v3 = vadd.f32 %v433_v55, %v367_v18  ;;  %v1705_v18 = vmul.f32 %v1574_v21, %v794_v54  ;;  %v1713_v47 = vld [vmem:[%s1536_s25 + $0x80] sm:$0xff] }
  0x75   : > { %2528 = vst [vmem:[#allocation15_spill] sm:$0xff] %v1646_v46  ;;  %v1687_v2 = vld [vmem:[#allocation2 + $0x32] sm:$0xff]  ;;  %v498_v4 = vmul.f32 %v1570_v19, %v1679_v62  ;;  %v1691_v5 = vld [vmem:[#allocation2 + $0x3a] sm:$0xff]  ;;  %v1693_v6 = vld [vmem:[#allocation2 + $0x48] sm:$0xff]  ;;  %v1716_v55 = vmul.f32 %v1574_v21, %v795_v63 }
  0x76   : > { %304 = vst [vmem:[#allocation2 + $0x81] sm:$0xff] %v1609_v34  ;;  %v529_v17 = vadd.f32 %v497_v61, %v464_v60  ;;  %v466_v22 = vadd.f32 %v434_v0, %v369_v49  ;;  %v499_v23 = vmul.f32 %v1570_v19, %v1693_v6  ;;  %v1709_v40 = vld [vmem:[#allocation2 + $0x50] sm:$0xff]  ;;  %v831_v60 = vmul.f32 %v1572_v20, %v794_v54  ;;  %v1723_v49 = vld [vmem:[%s1536_s25 + $0x88] sm:$0xff] }
  0x77   : > { %2529 = vst [vmem:[#allocation16_spill] sm:$0xff] %v1660_v52  ;;  %v530_v48 = vadd.f32 %v498_v4, %v465_v3  ;;  %v435_v61 = vmul.f32 %v1561_v13, %v1679_v62  ;;  %v1732_v3 = vmul.f32 %v1589_v28, %v1691_v5  ;;  %v1734_v54 = vld [vmem:[#allocation2 + $0x4a] sm:$0xff] }
  0x78   : > { %305 = vst [vmem:[#allocation2 + $0x91] sm:$0xff] %v1626_v39  ;;  %v630_v0 = vadd.f32 %v1581_v25, %v529_v17  ;;  %v531_v4 = vadd.f32 %v499_v23, %v466_v22  ;;  %v500_v25 = vmul.f32 %v1570_v19, %v1709_v40  ;;  %v1743_v17 = vld [vmem:[#allocation2 + $0x60] sm:$0xff]  ;;  %v371_v39 = vmul.f32 %v1553_v9, %v334_v53  ;;  %v1748_v22 = vld [vmem:[%s1536_s25 + $0x98] sm:$0xff] }
  0x79   : > { %2530 = vst [vmem:[#allocation17_spill] sm:$0xff] %v1676_v59  ;;  %v501_v11 = vmul.f32 %v1570_v19, %v1743_v17 }
  0x7a   : > { %306 = vst [vmem:[#allocation2 + $0x99] sm:$0xff] %v1643_v45  ;;  %v467_v45 = vadd.f32 %v435_v61, %v370_v8  ;;  %v695_v23 = vadd.f32 %v1584_v26, %v630_v0  ;;  %v436_v8 = vmul.f32 %v1561_v13, %v1693_v6  ;;  %v961_v61 = vmul.f32 %v1589_v28, %v1734_v54 }
  0x7b   : > { %307 = vst [vmem:[#allocation2 + $0xa9] sm:$0xff] %v1646_v46  ;;  %v1738_v46 = vld [vmem:[%s1536_s25 + $0x90] sm:$0xff]  ;;  %v832_v26 = vmul.f32 %v1572_v20, %v795_v63 }
  0x7c   : > { %2531 = vst [vmem:[#allocation18_spill] sm:$0xff] %v1702_v12  ;;  %v760_v0 = vadd.f32 %v1587_v27, %v695_v23  ;;  %v372_v27 = vmul.f32 %v1553_v9, %v1679_v62 }
  0x7d   : > { %308 = vst [vmem:[#allocation2 + $0xb1] sm:$0xff] %v1660_v52  ;;  %v1728_v52 = vmul.f32 %v1589_v28, %v1687_v2 }
  0x7e   : > { %2532 = vst [vmem:[#allocation19_spill] sm:$0xff] %v1713_v47 }
  0x7f   : > { %309 = vst [vmem:[#allocation2 + $0xc1] sm:$0xff] %v1676_v59  ;;  %v631_v59 = vadd.f32 %v1599_v31, %v530_v48  ;;  %v896_v31 = vmul.f32 %v1574_v21, %v1687_v2  ;;  %v1758_v48 = vld [vmem:[%s1536_s25 + $0xa0] sm:$0xff] }
  0x80   : > { %2533 = vst [vmem:[#allocation20_spill] sm:$0xff] %v1723_v49 }
  0x81   : > { %310 = vst [vmem:[#allocation2 + $0xc9] sm:$0xff] %v1702_v12  ;;  %v632_v12 = vadd.f32 %v1615_v36, %v531_v4  ;;  %v696_v53 = vadd.f32 %v1602_v32, %v631_v59  ;;  %v1766_v36 = vld [vmem:[%s1536_s25 + $0xa8] sm:$0xff]  ;;  %v1772_v32 = vld [vmem:[#allocation2 + $0x68] sm:$0xff] }
  0x82   : > { %311 = vst [vmem:[#allocation2 + $0xd9] sm:$0xff] %v1713_v47  ;;  %v532_v47 = vadd.f32 %v500_v25, %v467_v45  ;;  %v1776_v45 = vld [vmem:[%s1536_s25 + $0xb0] sm:$0xff]  ;;  %v1780_v25 = vld [vmem:[#allocation2 + $0x52] sm:$0xff] }
  0x83   : > { %312 = vst [vmem:[#allocation2 + $0xe1] sm:$0xff] %v1723_v49  ;;  %v697_v4 = vadd.f32 %v1618_v37, %v632_v12  ;;  %v468_v49 = vadd.f32 %v436_v8, %v371_v39  ;;  %v761_v59 = vadd.f32 %v1605_v33, %v696_v53  ;;  %v437_v37 = vmul.f32 %v1561_v13, %v1709_v40  ;;  %v1788_v39 = vld [vmem:[%s1536_s25 + $0xb8] sm:$0xff] }
  0x84   : > { %2534 = vst [vmem:[#allocation21_spill] sm:$0xff] %v1758_v48  ;;  %v633_v63 = vadd.f32 %v1629_v41, %v532_v47  ;;  %v861_v12 = vadd.f32 %v1596_v30, %v760_v0  ;;  %v897_v33 = vmul.f32 %v1574_v21, %v1691_v5  ;;  %v286_v47 = vld [vmem:[%s1536_s25 + $0xc0] sm:$0xff]  ;;  %v287_v30 = vld [vmem:[%s1536_s25 + $0xc8] sm:$0xff] }
  0x85   : > { %313 = vst [vmem:[#allocation2 + $0xf1] sm:$0xff] %v1738_v46  ;;  %v762_v23 = vadd.f32 %v1622_v38, %v697_v4  ;;  %v533_v41 = vadd.f32 %v501_v11, %v468_v49  ;;  %v862_v62 = vadd.f32 %v1612_v35, %v761_v59  ;;  %v469_v53 = vadd.f32 %v437_v37, %v372_v27  ;;  %v288_v35 = vld [vmem:[%s1536_s25 + $0xd0] sm:$0xff] }
  0x86   : > { %314 = vst [vmem:[#allocation2 + $0xf9] sm:$0xff] %v1748_v22  ;;  %v698_v8 = vadd.f32 %v1632_v42, %v633_v63  ;;  %v926_v38 = vadd.f32 %v1705_v18, %v861_v12  ;;  %v962_v11 = vmul.f32 %v1589_v28, %v1780_v25  ;;  %v1810_v59 = vld [vmem:[#allocation2 + $0x62] sm:$0xff]  ;;  %v833_v63 = vmul.f32 %v1572_v20, %v1687_v2 }
  0x87   : > { %315 = vst [vmem:[#allocation2 + $0x109] sm:$0xff] %v1758_v48  ;;  %v502_v48 = vmul.f32 %v1570_v19, %v1772_v32  ;;  %v863_v0 = vadd.f32 %v831_v60, %v762_v23  ;;  %v634_v49 = vadd.f32 %v1639_v44, %v533_v41  ;;  %v927_v42 = vadd.f32 %v1716_v55, %v862_v62  ;;  %v289_v60 = vld [vmem:[%s1536_s25 + $0xd8] sm:$0xff]  ;;  %v1819_v44 = vld [vmem:[%s2499_s2] ss:$0 sm:$0xff] }
  0x88   : > { %316 = vst [vmem:[#allocation2 + $0x111] sm:$0xff] %v1766_v36  ;;  %v763_v4 = vadd.f32 %v1636_v43, %v698_v8  ;;  %v991_v27 = vadd.f32 %v1728_v52, %v926_v38  ;;  %v1822_v43 = vld [vmem:[#allocation2 + $0x78] sm:$0xff]  ;;  %v373_v2 = vmul.f32 %v1553_v9, %v1693_v6  ;;  %v438_v41 = vmul.f32 %v1561_v13, %v1743_v17 }
  0x89   : > { %317 = vst [vmem:[#allocation2 + $0x121] sm:$0xff] %v1776_v45  ;;  %v534_v18 = vadd.f32 %v502_v48, %v469_v53  ;;  %v928_v37 = vadd.f32 %v896_v31, %v863_v0  ;;  %v699_v55 = vadd.f32 %v1652_v50, %v634_v49  ;;  %v290_v48 = vld [vmem:[%s1536_s25 + $0xe0] sm:$0xff]  ;;  %v992_v12 = vadd.f32 %v1732_v3, %v927_v42  ;;  %v291_v31 = vld [vmem:[%s1536_s25 + $0xe8] sm:$0xff]  ;;  %v292_v3 = vld [vmem:[%s1536_s25 + $0xf0] sm:$0xff] }
  0x8a   : > { %318 = vst [vmem:[#allocation2 + $0x129] sm:$0xff] %v1788_v39  ;;  %v864_v23 = vadd.f32 %v832_v26, %v763_v4  ;;  %v898_v62 = vmul.f32 %v1574_v21, %v1734_v54  ;;  %v963_v6 = vmul.f32 %v1589_v28, %v1810_v59  ;;  %v503_v53 = vmul.f32 %v1570_v19, %v1822_v43  ;;  %v1849_v42 = vld [vmem:[#allocation2 + $0x80] sm:$0xff] }
  0x8b   : > { %319 = vst [vmem:[#allocation2 + $0x139] sm:$0xff] %v286_v47  ;;  %v635_v52 = vadd.f32 %v1664_v56, %v534_v18  ;;  %v993_v50 = vadd.f32 %v961_v61, %v928_v37  ;;  %v764_v47 = vadd.f32 %v1656_v51, %v699_v55  ;;  %v470_v56 = vadd.f32 %v438_v41, %v373_v2  ;;  %v1852_v18 = vld [vmem:[#allocation2 + $0x6a] sm:$0xff] }
  0x8c   : > { %320 = vst [vmem:[#allocation2 + $0x141] sm:$0xff] %v287_v30  ;;  %v929_v26 = vadd.f32 %v897_v33, %v864_v23  ;;  %v293_v30 = vld [vmem:[%s1536_s25 + $0xf8] sm:$0xff]  ;;  %v1027_v61 = vadd.f32 %v1819_v44, %v991_v27  ;;  %v834_v38 = vmul.f32 %v1572_v20, %v1691_v5  ;;  %v899_v0 = vmul.f32 %v1574_v21, %v1780_v25 }
  0x8d   : > { %321 = vst [vmem:[#allocation2 + $0x151] sm:$0xff] %v288_v35  ;;  %v700_v8 = vadd.f32 %v1668_v57, %v635_v52  ;;  %v865_v51 = vadd.f32 %v833_v63, %v764_v47  ;;  %v1028_v33 = vadd.f32 %v1819_v44, %v992_v12  ;;  %v535_v35 = vadd.f32 %v503_v53, %v470_v56  ;;  %v1875_v52 = vld [vmem:[#allocation2 + $0x90] sm:$0xff] }
  0x8e   : > { %322 = vst [vmem:[#allocation2 + $0x159] sm:$0xff] %v289_v60  ;;  %v994_v57 = vadd.f32 %v962_v11, %v929_v26  ;;  %v1029_v4 = vadd.f32 %v1819_v44, %v993_v50  ;;  %v374_v5 = vmul.f32 %v1553_v9, %v1709_v40  ;;  %v439_v60 = vmul.f32 %v1561_v13, %v1772_v32 }
  0x8f   : > { %323 = vst [vmem:[#allocation2 + $0x169] sm:$0xff] %v290_v48  ;;  %v765_v49 = vadd.f32 %v1672_v58, %v700_v8  ;;  %v930_v63 = vadd.f32 %v898_v62, %v865_v51  ;;  %v636_v58 = vadd.f32 %v1684_v1, %v535_v35  ;;  %v734_v37 = vmul.f32 %v1567_v16, %v1593_v29 }
  0x90   : > { %324 = vst [vmem:[#allocation2 + $0x171] sm:$0xff] %v291_v31  ;;  %v1030_v11 = vadd.f32 %v1819_v44, %v994_v57  ;;  %v471_v55 = vadd.f32 %v439_v60, %v374_v5  ;;  %v504_v2 = vmul.f32 %v1570_v19, %v1849_v42  ;;  %v605_v48 = vmul.f32 %v1563_v14, %v1556_v10 }
  0x91   : > { %325 = vst [vmem:[#allocation2 + $0x181] sm:$0xff] %v292_v3  ;;  %v866_v27 = vadd.f32 %v834_v38, %v765_v49  ;;  %v995_v40 = vadd.f32 %v963_v6, %v930_v63  ;;  %v964_v12 = vmul.f32 %v1589_v28, %v1852_v18  ;;  %v701_v23 = vadd.f32 %v1698_v7, %v636_v58  ;;  %v1884_v6 = vld [vmem:[#allocation2 + $0x7a] sm:$0xff]  ;;  %v2536_v58 = vld [vmem:[#allocation13_spill] sm:$0xff] }
  0x92   : > { %326 = vst [vmem:[#allocation2 + $0x189] sm:$0xff] %v293_v30  ;;  %v835_v31 = vmul.f32 %v1572_v20, %v1734_v54  ;;  %v536_v50 = vadd.f32 %v504_v2, %v471_v55  ;;  %v670_v10 = vmul.f32 %v1565_v15, %v1578_v24  ;;  %v375_v7 = vmul.f32 %v1553_v9, %v1743_v17  ;;  %v2535_v17 = vld [vmem:[#allocation12_spill] sm:$0xff]  ;;  %v1921_v2 = vld [vmem:[#allocation2 + $0x92] sm:$0xff] }
  0x93   : > { %1059 = vst [vmem:[%s1864_s17] sm:$0xff] %v1027_v61  ;;  %v931_v1 = vadd.f32 %v899_v0, %v866_v27  ;;  %v1031_v41 = vadd.f32 %v1819_v44, %v995_v40  ;;  %v766_v62 = vadd.f32 %v734_v37, %v701_v23  ;;  %v440_v3 = vmul.f32 %v1561_v13, %v1822_v43  ;;  %v1900_v38 = vld [vmem:[#allocation2 + $0x98] sm:$0xff] }
  0x94   : > { %1060 = vst [vmem:[%s1864_s17 + $0x8] sm:$0xff] %v1028_v33  ;;  %v900_v54 = vmul.f32 %v1574_v21, %v1810_v59  ;;  %v637_v26 = vadd.f32 %v605_v48, %v536_v50  ;;  %v735_v8 = vmul.f32 %v1567_v16, %v1609_v34  ;;  %v505_v56 = vmul.f32 %v1570_v19, %v1875_v52 }
  0x95   : > { %1061 = vst [vmem:[%s1864_s17 + $0x10] sm:$0xff] %v1029_v4  ;;  %v996_v47 = vadd.f32 %v964_v12, %v931_v1  ;;  %v867_v30 = vadd.f32 %v835_v31, %v766_v62  ;;  %v472_v61 = vadd.f32 %v440_v3, %v375_v7  ;;  %v606_v51 = vmul.f32 %v1563_v14, %v2535_v17  ;;  %v1909_v4 = vld [vmem:[#allocation2 + $0x82] sm:$0xff] }
  0x96   : > { %1062 = vst [vmem:[%s1864_s17 + $0x18] sm:$0xff] %v1030_v11  ;;  %v965_v0 = vmul.f32 %v1589_v28, %v1884_v6  ;;  %v702_v33 = vadd.f32 %v670_v10, %v637_v26  ;;  %v836_v57 = vmul.f32 %v1572_v20, %v1780_v25  ;;  %v671_v49 = vmul.f32 %v1565_v15, %v1593_v29 }
  0x97   : > { %1063 = vst [vmem:[%s1864_s17 + $0x20] sm:$0xff] %v1031_v41  ;;  %v1032_v53 = vadd.f32 %v1819_v44, %v996_v47  ;;  %v932_v35 = vadd.f32 %v900_v54, %v867_v30  ;;  %v537_v63 = vadd.f32 %v505_v56, %v472_v61  ;;  %v376_v5 = vmul.f32 %v1553_v9, %v1772_v32  ;;  %v1932_v47 = vld [vmem:[#allocation2 + $0xa8] sm:$0xff]  ;;  %v1947_v30 = vld [vmem:[#allocation2 + $0x9a] sm:$0xff] }
  0x98   : > { %v441_v60 = vmul.f32 %v1561_v13, %v1849_v42  ;;  %v767_v11 = vadd.f32 %v735_v8, %v702_v33  ;;  %v901_v27 = vmul.f32 %v1574_v21, %v1852_v18  ;;  %v736_v25 = vmul.f32 %v1567_v16, %v2536_v58  ;;  %v2537_v8 = vld [vmem:[#allocation14_spill] sm:$0xff] }
  0x99   : > { %1064 = vst [vmem:[%s1864_s17 + $0x28] sm:$0xff] %v1032_v53  ;;  %v506_v37 = vmul.f32 %v1570_v19, %v1900_v38  ;;  %v997_v40 = vadd.f32 %v965_v0, %v932_v35  ;;  %v638_v55 = vadd.f32 %v606_v51, %v537_v63  ;;  %v607_v32 = vmul.f32 %v1563_v14, %v1578_v24 }
  0x9a   : > { %v473_v48 = vadd.f32 %v441_v60, %v376_v5  ;;  %v868_v1 = vadd.f32 %v836_v57, %v767_v11  ;;  %v966_v12 = vmul.f32 %v1589_v28, %v1909_v4  ;;  %v837_v23 = vmul.f32 %v1572_v20, %v1810_v59 }
  0x9b   : > { %v672_v41 = vmul.f32 %v1565_v15, %v1609_v34  ;;  %v1033_v31 = vadd.f32 %v1819_v44, %v997_v40  ;;  %v703_v50 = vadd.f32 %v671_v49, %v638_v55  ;;  %v377_v62 = vmul.f32 %v1553_v9, %v1822_v43  ;;  %v1955_v49 = vld [vmem:[#allocation2 + $0xb0] sm:$0xff] }
  0x9c   : > { %v538_v10 = vadd.f32 %v506_v37, %v473_v48  ;;  %v933_v24 = vadd.f32 %v901_v27, %v868_v1  ;;  %v902_v7 = vmul.f32 %v1574_v21, %v1884_v6  ;;  %v967_v3 = vmul.f32 %v1589_v28, %v1921_v2 }
  0x9d   : > { %v442_v59 = vmul.f32 %v1561_v13, %v1875_v52  ;;  %1065 = vst [vmem:[%s1864_s17 + $0x30] sm:$0xff] %v1033_v31  ;;  %v768_v54 = vadd.f32 %v736_v25, %v703_v50  ;;  %v737_v56 = vmul.f32 %v1567_v16, %v2537_v8  ;;  %v838_v53 = vmul.f32 %v1572_v20, %v1852_v18  ;;  %v2538_v25 = vld [vmem:[#allocation15_spill] sm:$0xff]  ;;  %v1979_v50 = vld [vmem:[#allocation2 + $0xaa] sm:$0xff] }
  0x9e   : > { %v639_v26 = vadd.f32 %v607_v32, %v538_v10  ;;  %v998_v43 = vadd.f32 %v966_v12, %v933_v24  ;;  %v507_v17 = vmul.f32 %v1570_v19, %v1932_v47  ;;  %v608_v51 = vmul.f32 %v1563_v14, %v1593_v29  ;;  %v1973_v32 = vld [vmem:[#allocation2 + $0xc0] sm:$0xff] }
  0x9f   : > { %v474_v61 = vadd.f32 %v442_v59, %v377_v62  ;;  %v869_v0 = vadd.f32 %v837_v23, %v768_v54  ;;  %v903_v57 = vmul.f32 %v1574_v21, %v1909_v4  ;;  %v378_v18 = vmul.f32 %v1553_v9, %v1849_v42 }
  0xa0   : > { %v704_v33 = vadd.f32 %v672_v41, %v639_v26  ;;  %v1034_v35 = vadd.f32 %v1819_v44, %v998_v43  ;;  %v673_v5 = vmul.f32 %v1565_v15, %v2536_v58  ;;  %v443_v60 = vmul.f32 %v1561_v13, %v1900_v38 }
  0xa1   : > { %v539_v63 = vadd.f32 %v507_v17, %v474_v61  ;;  %v934_v29 = vadd.f32 %v902_v7, %v869_v0  ;;  %v968_v27 = vmul.f32 %v1589_v28, %v1947_v30  ;;  %v738_v37 = vmul.f32 %v1567_v16, %v2538_v25 }
  0xa2   : > { %v769_v11 = vadd.f32 %v737_v56, %v704_v33  ;;  %1066 = vst [vmem:[%s1864_s17 + $0x38] sm:$0xff] %v1034_v35  ;;  %v475_v42 = vadd.f32 %v443_v60, %v378_v18  ;;  %v508_v55 = vmul.f32 %v1570_v19, %v1955_v49  ;;  %v609_v48 = vmul.f32 %v1563_v14, %v1609_v34  ;;  %v1999_v33 = vld [vmem:[#allocation2 + $0xb2] sm:$0xff]  ;;  %v2003_v18 = vld [vmem:[#allocation2 + $0xc8] sm:$0xff] }
  0xa3   : > { %v640_v40 = vadd.f32 %v608_v51, %v539_v63  ;;  %v999_v1 = vadd.f32 %v967_v3, %v934_v29  ;;  %v839_v23 = vmul.f32 %v1572_v20, %v1884_v6  ;;  %v674_v41 = vmul.f32 %v1565_v15, %v2537_v8  ;;  %v2539_v3 = vld [vmem:[#allocation16_spill] sm:$0xff] }
  0xa4   : > { %v870_v12 = vadd.f32 %v838_v53, %v769_v11  ;;  %v540_v10 = vadd.f32 %v508_v55, %v475_v42  ;;  %v379_v62 = vmul.f32 %v1553_v9, %v1875_v52  ;;  %v444_v34 = vmul.f32 %v1561_v13, %v1932_v47 }
  0xa5   : > { %v705_v31 = vadd.f32 %v673_v5, %v640_v40  ;;  %v1035_v24 = vadd.f32 %v1819_v44, %v999_v1  ;;  %v739_v59 = vmul.f32 %v1567_v16, %v2539_v3  ;;  %v509_v6 = vmul.f32 %v1570_v19, %v1973_v32 }
  0xa6   : > { %v935_v7 = vadd.f32 %v903_v57, %v870_v12  ;;  %v641_v26 = vadd.f32 %v609_v48, %v540_v10  ;;  %v476_v56 = vadd.f32 %v444_v34, %v379_v62  ;;  %v610_v53 = vmul.f32 %v1563_v14, %v2536_v58 }
  0xa7   : > { %v770_v54 = vadd.f32 %v738_v37, %v705_v31  ;;  %1067 = vst [vmem:[%s1864_s17 + $0x40] sm:$0xff] %v1035_v24  ;;  %v904_v43 = vmul.f32 %v1574_v21, %v1921_v2  ;;  %v969_v61 = vmul.f32 %v1589_v28, %v1979_v50  ;;  %v840_v17 = vmul.f32 %v1572_v20, %v1909_v4  ;;  %v2025_v31 = vld [vmem:[#allocation2 + $0xc2] sm:$0xff] }
  0xa8   : > { %v1000_v52 = vadd.f32 %v968_v27, %v935_v7  ;;  %v706_v0 = vadd.f32 %v674_v41, %v641_v26  ;;  %v541_v57 = vadd.f32 %v509_v6, %v476_v56  ;;  %v675_v58 = vmul.f32 %v1565_v15, %v2538_v25  ;;  %v2540_v27 = vld [vmem:[#allocation17_spill] sm:$0xff]  ;;  %v2023_v41 = vld [vmem:[#allocation2 + $0xd8] sm:$0xff]  ;;  %v2541_v6 = vld [vmem:[#allocation18_spill] sm:$0xff] }
  0xa9   : > { %v871_v51 = vadd.f32 %v839_v23, %v770_v54  ;;  %v905_v63 = vmul.f32 %v1574_v21, %v1947_v30  ;;  %v380_v5 = vmul.f32 %v1553_v9, %v1900_v38  ;;  %v445_v4 = vmul.f32 %v1561_v13, %v1955_v49 }
  0xaa   : > { %v1036_v35 = vadd.f32 %v1819_v44, %v1000_v52  ;;  %v771_v29 = vadd.f32 %v739_v59, %v706_v0  ;;  %v642_v11 = vadd.f32 %v610_v53, %v541_v57  ;;  %v740_v37 = vmul.f32 %v1567_v16, %v2540_v27 }
  0xab   : > { %v936_v60 = vadd.f32 %v904_v43, %v871_v51  ;;  %v970_v40 = vmul.f32 %v1589_v28, %v1999_v33  ;;  %v477_v42 = vadd.f32 %v445_v4, %v380_v5  ;;  %v510_v55 = vmul.f32 %v1570_v19, %v2003_v18 }
  0xac   : > { %1068 = vst [vmem:[%s1864_s17 + $0x48] sm:$0xff] %v1036_v35  ;;  %v611_v38 = vmul.f32 %v1563_v14, %v2537_v8  ;;  %v872_v1 = vadd.f32 %v840_v17, %v771_v29  ;;  %v707_v12 = vadd.f32 %v675_v58, %v642_v11  ;;  %v841_v23 = vmul.f32 %v1572_v20, %v1921_v2  ;;  %v2049_v58 = vld [vmem:[#allocation2 + $0xe0] sm:$0xff]  ;;  %v2542_v11 = vld [vmem:[#allocation19_spill] sm:$0xff] }
  0xad   : > { %v1001_v48 = vadd.f32 %v969_v61, %v936_v60  ;;  %v542_v10 = vadd.f32 %v510_v55, %v477_v42  ;;  %v676_v62 = vmul.f32 %v1565_v15, %v2539_v3  ;;  %v381_v34 = vmul.f32 %v1553_v9, %v1932_v47 }
  0xae   : > { %v446_v8 = vmul.f32 %v1561_v13, %v1973_v32  ;;  %v937_v7 = vadd.f32 %v905_v63, %v872_v1  ;;  %v772_v59 = vadd.f32 %v740_v37, %v707_v12  ;;  %v741_v2 = vmul.f32 %v1567_v16, %v2541_v6  ;;  %v2052_v63 = vld [vmem:[#allocation2 + $0xca] sm:$0xff]  ;;  %v2069_v12 = vld [vmem:[#allocation2 + $0xda] sm:$0xff] }
  0xaf   : > { %v1037_v24 = vadd.f32 %v1819_v44, %v1001_v48  ;;  %v643_v54 = vadd.f32 %v611_v38, %v542_v10  ;;  %v511_v56 = vmul.f32 %v1570_v19, %v2023_v41  ;;  %v612_v53 = vmul.f32 %v1563_v14, %v2538_v25  ;;  %v2073_v10 = vld [vmem:[#allocation2 + $0xf0] sm:$0xff] }
  0xb0   : > { %v478_v26 = vadd.f32 %v446_v8, %v381_v34  ;;  %v1002_v47 = vadd.f32 %v970_v40, %v937_v7  ;;  %v873_v52 = vadd.f32 %v841_v23, %v772_v59  ;;  %v906_v43 = vmul.f32 %v1574_v21, %v1979_v50 }
  0xb1   : > { %1069 = vst [vmem:[%s1864_s17 + $0x50] sm:$0xff] %v1037_v24  ;;  %v971_v61 = vmul.f32 %v1589_v28, %v2025_v31  ;;  %v708_v17 = vadd.f32 %v676_v62, %v643_v54  ;;  %v842_v51 = vmul.f32 %v1572_v20, %v1947_v30  ;;  %v677_v57 = vmul.f32 %v1565_v15, %v2540_v27 }
  0xb2   : > { %v543_v0 = vadd.f32 %v511_v56, %v478_v26  ;;  %v1038_v25 = vadd.f32 %v1819_v44, %v1002_v47  ;;  %v938_v35 = vadd.f32 %v906_v43, %v873_v52  ;;  %v382_v5 = vmul.f32 %v1553_v9, %v1955_v49  ;;  %v2543_v26 = vld [vmem:[#allocation20_spill] sm:$0xff] }
  0xb3   : > { %v447_v4 = vmul.f32 %v1561_v13, %v2003_v18  ;;  %v773_v60 = vadd.f32 %v741_v2, %v708_v17  ;;  %v907_v30 = vmul.f32 %v1574_v21, %v1999_v33  ;;  %v742_v37 = vmul.f32 %v1567_v16, %v2542_v11 }
  0xb4   : > { %v644_v29 = vadd.f32 %v612_v53, %v543_v0  ;;  %1070 = vst [vmem:[%s1864_s17 + $0x58] sm:$0xff] %v1038_v25  ;;  %v1003_v40 = vadd.f32 %v971_v61, %v938_v35  ;;  %v512_v55 = vmul.f32 %v1570_v19, %v2049_v58  ;;  %v613_v49 = vmul.f32 %v1563_v14, %v2539_v3  ;;  %v2093_v61 = vld [vmem:[#allocation2 + $0xf8] sm:$0xff] }
  0xb5   : > { %v479_v42 = vadd.f32 %v447_v4, %v382_v5  ;;  %v874_v38 = vadd.f32 %v842_v51, %v773_v60  ;;  %v972_v48 = vmul.f32 %v1589_v28, %v2052_v63  ;;  %v843_v23 = vmul.f32 %v1572_v20, %v1979_v50  ;;  %v2102_v5 = vld [vmem:[#allocation2 + $0xe2] sm:$0xff] }
  0xb6   : > { %v709_v1 = vadd.f32 %v677_v57, %v644_v29  ;;  %v1039_v62 = vadd.f32 %v1819_v44, %v1003_v40  ;;  %v678_v8 = vmul.f32 %v1565_v15, %v2541_v6  ;;  %v383_v3 = vmul.f32 %v1553_v9, %v1973_v32  ;;  %v2113_v40 = vld [vmem:[#allocation2 + $0xf2] sm:$0xff] }
  0xb7   : > { %v544_v34 = vadd.f32 %v512_v55, %v479_v42  ;;  %v939_v24 = vadd.f32 %v907_v30, %v874_v38  ;;  %v908_v59 = vmul.f32 %v1574_v21, %v2025_v31  ;;  %v448_v2 = vmul.f32 %v1561_v13, %v2023_v41 }
  0xb8   : > { %v774_v7 = vadd.f32 %v742_v37, %v709_v1  ;;  %1071 = vst [vmem:[%s1864_s17 + $0x60] sm:$0xff] %v1039_v62  ;;  %v973_v50 = vmul.f32 %v1589_v28, %v2069_v12  ;;  %v743_v56 = vmul.f32 %v1567_v16, %v2543_v26  ;;  %v513_v53 = vmul.f32 %v1570_v19, %v2073_v10 }
  0xb9   : > { %v645_v54 = vadd.f32 %v613_v49, %v544_v34  ;;  %v1004_v32 = vadd.f32 %v972_v48, %v939_v24  ;;  %v480_v52 = vadd.f32 %v448_v2, %v383_v3  ;;  %v614_v43 = vmul.f32 %v1563_v14, %v2540_v27 }
  0xba   : > { %v875_v47 = vadd.f32 %v843_v23, %v774_v7  ;;  %v844_v51 = vmul.f32 %v1572_v20, %v1999_v33  ;;  %v679_v0 = vmul.f32 %v1565_v15, %v2542_v11  ;;  %v384_v57 = vmul.f32 %v1553_v9, %v2003_v18 }
  0xbb   : > { %v710_v17 = vadd.f32 %v678_v8, %v645_v54  ;;  %v1040_v25 = vadd.f32 %v1819_v44, %v1004_v32  ;;  %v545_v4 = vadd.f32 %v513_v53, %v480_v52  ;;  %v449_v27 = vmul.f32 %v1561_v13, %v2049_v58  ;;  %v2124_v8 = vld [vmem:[#allocation2 + $0x108] sm:$0xff] }
  0xbc   : > { %v940_v35 = vadd.f32 %v908_v59, %v875_v47  ;;  %v909_v30 = vmul.f32 %v1574_v21, %v2052_v63  ;;  %v744_v33 = vmul.f32 %v1567_v16, %v1738_v46  ;;  %v514_v29 = vmul.f32 %v1570_v19, %v2093_v61 }
  0xbd   : > { %v775_v60 = vadd.f32 %v743_v56, %v710_v17  ;;  %1072 = vst [vmem:[%s1864_s17 + $0x68] sm:$0xff] %v1040_v25  ;;  %v646_v37 = vadd.f32 %v614_v43, %v545_v4  ;;  %v481_v42 = vadd.f32 %v449_v27, %v384_v57  ;;  %v615_v55 = vmul.f32 %v1563_v14, %v2541_v6  ;;  %v2139_v56 = vld [vmem:[#allocation2 + $0xfa] sm:$0xff] }
  0xbe   : > { %v1005_v18 = vadd.f32 %v973_v50, %v940_v35  ;;  %v974_v38 = vmul.f32 %v1589_v28, %v2102_v5  ;;  %v845_v48 = vmul.f32 %v1572_v20, %v2025_v31  ;;  %v680_v1 = vmul.f32 %v1565_v15, %v2543_v26 }
  0xbf   : > { %v876_v49 = vadd.f32 %v844_v51, %v775_v60  ;;  %v711_v62 = vadd.f32 %v679_v0, %v646_v37  ;;  %v546_v34 = vadd.f32 %v514_v29, %v481_v42  ;;  %v385_v3 = vmul.f32 %v1553_v9, %v2023_v41  ;;  %v2147_v51 = vld [vmem:[#allocation2 + $0x110] sm:$0xff]  ;;  %v2544_v60 = vld [vmem:[#allocation21_spill] sm:$0xff] }
  0xc0   : > { %v1041_v23 = vadd.f32 %v1819_v44, %v1005_v18  ;;  %v910_v24 = vmul.f32 %v1574_v21, %v2069_v12  ;;  %v975_v7 = vmul.f32 %v1589_v28, %v2113_v40  ;;  %v450_v31 = vmul.f32 %v1561_v13, %v2073_v10  ;;  %v2165_v37 = vld [vmem:[#allocation2 + $0x120] sm:$0xff] }
  0xc1   : > { %v941_v6 = vadd.f32 %v909_v30, %v876_v49  ;;  %v776_v59 = vadd.f32 %v744_v33, %v711_v62  ;;  %v647_v2 = vadd.f32 %v615_v55, %v546_v34  ;;  %v745_v50 = vmul.f32 %v1567_v16, %v1748_v22 }
  0xc2   : > { %1073 = vst [vmem:[%s1864_s17 + $0x70] sm:$0xff] %v1041_v23  ;;  %v846_v54 = vmul.f32 %v1572_v20, %v2052_v63  ;;  %v482_v53 = vadd.f32 %v450_v31, %v385_v3  ;;  %v515_v32 = vmul.f32 %v1570_v19, %v2124_v8  ;;  %v616_v47 = vmul.f32 %v1563_v14, %v2542_v11 }
  0xc3   : > { %v1006_v41 = vadd.f32 %v974_v38, %v941_v6  ;;  %v877_v52 = vadd.f32 %v845_v48, %v776_v59  ;;  %v712_v43 = vadd.f32 %v680_v1, %v647_v2  ;;  %v911_v17 = vmul.f32 %v1574_v21, %v2102_v5  ;;  %v2171_v1 = vld [vmem:[#allocation2 + $0x10a] sm:$0xff] }
  0xc4   : > { %v386_v63 = vmul.f32 %v1553_v9, %v2049_v58  ;;  %v547_v57 = vadd.f32 %v515_v32, %v482_v53  ;;  %v681_v25 = vmul.f32 %v1565_v15, %v1738_v46  ;;  %v451_v35 = vmul.f32 %v1561_v13, %v2093_v61  ;;  %v2191_v32 = vld [vmem:[#allocation2 + $0x112] sm:$0xff] }
  0xc5   : > { %v1042_v0 = vadd.f32 %v1819_v44, %v1006_v41  ;;  %v942_v11 = vadd.f32 %v910_v24, %v877_v52  ;;  %v777_v4 = vadd.f32 %v745_v50, %v712_v43  ;;  %v976_v27 = vmul.f32 %v1589_v28, %v2139_v56  ;;  %v2195_v52 = vld [vmem:[#allocation2 + $0x128] sm:$0xff] }
  0xc6   : > { %v746_v30 = vmul.f32 %v1567_v16, %v2544_v60  ;;  %v648_v33 = vadd.f32 %v616_v47, %v547_v57  ;;  %v483_v58 = vadd.f32 %v451_v35, %v386_v63  ;;  %v516_v29 = vmul.f32 %v1570_v19, %v2147_v51 }
  0xc7   : > { %1074 = vst [vmem:[%s1864_s17 + $0x78] sm:$0xff] %v1042_v0  ;;  %v617_v18 = vmul.f32 %v1563_v14, %v2543_v26  ;;  %v1007_v42 = vadd.f32 %v975_v7, %v942_v11  ;;  %v878_v55 = vadd.f32 %v846_v54, %v777_v4  ;;  %v847_v49 = vmul.f32 %v1572_v20, %v2069_v12 }
  0xc8   : > { %v682_v38 = vmul.f32 %v1565_v15, %v1748_v22  ;;  %v713_v48 = vadd.f32 %v681_v25, %v648_v33  ;;  %v548_v23 = vadd.f32 %v516_v29, %v483_v58  ;;  %v387_v62 = vmul.f32 %v1553_v9, %v2073_v10 }
  0xc9   : > { %v452_v26 = vmul.f32 %v1561_v13, %v2124_v8  ;;  %v1043_v34 = vadd.f32 %v1819_v44, %v1007_v42  ;;  %v943_v3 = vadd.f32 %v911_v17, %v878_v55  ;;  %v747_v6 = vmul.f32 %v1567_v16, %v1766_v36 }
  0xca   : > { %v517_v12 = vmul.f32 %v1570_v19, %v2165_v37  ;;  %v778_v24 = vadd.f32 %v746_v30, %v713_v48  ;;  %v649_v7 = vadd.f32 %v617_v18, %v548_v23  ;;  %v618_v59 = vmul.f32 %v1563_v14, %v1738_v46  ;;  %v2215_v18 = vld [vmem:[#allocation2 + $0x138] sm:$0xff] }
  0xcb   : > { %v484_v31 = vadd.f32 %v452_v26, %v387_v62  ;;  %1075 = vst [vmem:[%s1864_s17 + $0x80] sm:$0xff] %v1043_v34  ;;  %v1008_v10 = vadd.f32 %v976_v27, %v943_v3  ;;  %v912_v2 = vmul.f32 %v1574_v21, %v2113_v40  ;;  %v977_v50 = vmul.f32 %v1589_v28, %v2171_v1  ;;  %v2224_v62 = vld [vmem:[#allocation2 + $0x122] sm:$0xff] }
  0xcc   : > { %v848_v54 = vmul.f32 %v1572_v20, %v2102_v5  ;;  %v879_v41 = vadd.f32 %v847_v49, %v778_v24  ;;  %v714_v53 = vadd.f32 %v682_v38, %v649_v7  ;;  %v683_v46 = vmul.f32 %v1565_v15, %v2544_v60 }
  0xcd   : > { %v549_v47 = vadd.f32 %v517_v12, %v484_v31  ;;  %v1044_v43 = vadd.f32 %v1819_v44, %v1008_v10  ;;  %v913_v17 = vmul.f32 %v1574_v21, %v2139_v56  ;;  %v388_v63 = vmul.f32 %v1553_v9, %v2093_v61 }
  0xce   : > { %v453_v5 = vmul.f32 %v1561_v13, %v2147_v51  ;;  %v944_v0 = vadd.f32 %v912_v2, %v879_v41  ;;  %v779_v57 = vadd.f32 %v747_v6, %v714_v53  ;;  %v748_v35 = vmul.f32 %v1567_v16, %v1776_v45  ;;  %v2239_v2 = vld [vmem:[#allocation2 + $0x140] sm:$0xff] }
  0xcf   : > { %v650_v25 = vadd.f32 %v618_v59, %v549_v47  ;;  %1076 = vst [vmem:[%s1864_s17 + $0x88] sm:$0xff] %v1044_v43  ;;  %v978_v11 = vmul.f32 %v1589_v28, %v2191_v32  ;;  %v518_v27 = vmul.f32 %v1570_v19, %v2195_v52  ;;  %v619_v61 = vmul.f32 %v1563_v14, %v1748_v22  ;;  %v2244_v41 = vld [vmem:[#allocation2 + $0x139] sm:$0xff] }
  0xd0   : > { %v485_v4 = vadd.f32 %v453_v5, %v388_v63  ;;  %v1009_v30 = vadd.f32 %v977_v50, %v944_v0  ;;  %v880_v33 = vadd.f32 %v848_v54, %v779_v57  ;;  %v849_v29 = vmul.f32 %v1572_v20, %v2113_v40  ;;  %v2242_v54 = vld [vmem:[#allocation2 + $0x12a] sm:$0xff] }
  0xd1   : > { %v715_v58 = vadd.f32 %v683_v46, %v650_v25  ;;  %v684_v55 = vmul.f32 %v1565_v15, %v1766_v36  ;;  %v389_v49 = vmul.f32 %v1553_v9, %v2124_v8  ;;  %v454_v38 = vmul.f32 %v1561_v13, %v2165_v37 }
  0xd2   : > { %v550_v42 = vadd.f32 %v518_v27, %v485_v4  ;;  %v1045_v22 = vadd.f32 %v1819_v44, %v1009_v30  ;;  %v945_v48 = vadd.f32 %v913_v17, %v880_v33  ;;  %v749_v40 = vmul.f32 %v1567_v16, %v1788_v39  ;;  %v2263_v4 = vld [vmem:[#allocation2 + $0x13a] sm:$0xff]  ;;  %v2265_v27 = vld [vmem:[#allocation2 + $0x150] sm:$0xff] }
  0xd3   : > { %v780_v23 = vadd.f32 %v748_v35, %v715_v58  ;;  %v486_v34 = vadd.f32 %v454_v38, %v389_v49  ;;  %v519_v3 = vmul.f32 %v1570_v19, %v2215_v18  ;;  %v620_v8 = vmul.f32 %v1563_v14, %v2544_v60 }
  0xd4   : > { %v651_v26 = vadd.f32 %v619_v61, %v550_v42  ;;  %1077 = vst [vmem:[%s1864_s17 + $0x90] sm:$0xff] %v1045_v22  ;;  %v1010_v6 = vadd.f32 %v978_v11, %v945_v48  ;;  %v914_v24 = vmul.f32 %v1574_v21, %v2171_v1  ;;  %v979_v7 = vmul.f32 %v1589_v28, %v2224_v62 }
  0xd5   : > { %v881_v12 = vadd.f32 %v849_v29, %v780_v23  ;;  %v551_v59 = vadd.f32 %v519_v3, %v486_v34  ;;  %v685_v10 = vmul.f32 %v1565_v15, %v1776_v45  ;;  %v390_v53 = vmul.f32 %v1553_v9, %v2147_v51  ;;  %v2287_v34 = vld [vmem:[#allocation2 + $0x158] sm:$0xff] }
  0xd6   : > { %v716_v31 = vadd.f32 %v684_v55, %v651_v26  ;;  %v1046_v50 = vadd.f32 %v1819_v44, %v1010_v6  ;;  %v455_v47 = vmul.f32 %v1561_v13, %v2195_v52  ;;  %v850_v43 = vmul.f32 %v1572_v20, %v2139_v56  ;;  %v2274_v55 = vld [vmem:[#allocation2 + $0x141] sm:$0xff] }
  0xd7   : > { %v946_v60 = vadd.f32 %v914_v24, %v881_v12  ;;  %v915_v17 = vmul.f32 %v1574_v21, %v2191_v32  ;;  %v652_v63 = vadd.f32 %v620_v8, %v551_v59  ;;  %v520_v57 = vmul.f32 %v1570_v19, %v2239_v2 }
  0xd8   : > { %v781_v46 = vadd.f32 %v749_v40, %v716_v31  ;;  %1078 = vst [vmem:[%s1864_s17 + $0x98] sm:$0xff] %v1046_v50  ;;  %v487_v0 = vadd.f32 %v455_v47, %v390_v53  ;;  %v621_v51 = vmul.f32 %v1563_v14, %v1766_v36  ;;  %v980_v35 = vmul.f32 %v1589_v28, %v2242_v54  ;;  %v2296_v31 = vld [vmem:[#allocation2 + $0x142] sm:$0xff] }
  0xd9   : > { %v1011_v5 = vadd.f32 %v979_v7, %v946_v60  ;;  %v717_v11 = vadd.f32 %v685_v10, %v652_v63  ;;  %v750_v56 = vmul.f32 %v1567_v16, %v2244_v41  ;;  %v686_v33 = vmul.f32 %v1565_v15, %v1788_v39 }
  0xda   : > { %v882_v25 = vadd.f32 %v850_v43, %v781_v46  ;;  %v552_v30 = vadd.f32 %v520_v57, %v487_v0  ;;  %v391_v36 = vmul.f32 %v1553_v9, %v2165_v37  ;;  %v851_v42 = vmul.f32 %v1572_v20, %v2171_v1  ;;  %v2309_v46 = vld [vmem:[#allocation2 + $0x152] sm:$0xff] }
  0xdb   : > { %v1047_v61 = vadd.f32 %v1819_v44, %v1011_v5  ;;  %v782_v29 = vadd.f32 %v750_v56, %v717_v11  ;;  %v456_v49 = vmul.f32 %v1561_v13, %v2215_v18  ;;  %v916_v38 = vmul.f32 %v1574_v21, %v2224_v62  ;;  %v2322_v56 = vld [vmem:[#allocation2 + $0x168] sm:$0xff] }
  0xdc   : > { %v947_v58 = vadd.f32 %v915_v17, %v882_v25  ;;  %v981_v22 = vmul.f32 %v1589_v28, %v2263_v4  ;;  %v653_v48 = vadd.f32 %v621_v51, %v552_v30  ;;  %v521_v37 = vmul.f32 %v1570_v19, %v2265_v27  ;;  %v2319_v51 = vld [vmem:[#allocation2 + $0x159] sm:$0xff] }
  0xdd   : > { %1079 = vst [vmem:[%s1864_s17 + $0xa0] sm:$0xff] %v1047_v61  ;;  %v883_v40 = vadd.f32 %v851_v42, %v782_v29  ;;  %v488_v26 = vadd.f32 %v456_v49, %v391_v36  ;;  %v622_v1 = vmul.f32 %v1563_v14, %v1776_v45  ;;  %v751_v8 = vmul.f32 %v1567_v16, %v2274_v55  ;;  %v2298_v45 = vld [vmem:[#allocation2 + $0x151] sm:$0xff]  ;;  %v2337_v49 = vld [vmem:[#allocation2 + $0x15a] sm:$0xff] }
  0xde   : > { %v1012_v23 = vadd.f32 %v980_v35, %v947_v58  ;;  %v718_v3 = vadd.f32 %v686_v33, %v653_v48  ;;  %v852_v6 = vmul.f32 %v1572_v20, %v2191_v32  ;;  %v392_v12 = vmul.f32 %v1553_v9, %v2195_v52 }
  0xdf   : > { %v948_v7 = vadd.f32 %v916_v38, %v883_v40  ;;  %v553_v59 = vadd.f32 %v521_v37, %v488_v26  ;;  %v457_v10 = vmul.f32 %v1561_v13, %v2239_v2  ;;  %v917_v60 = vmul.f32 %v1574_v21, %v2242_v54  ;;  %v2345_v26 = vld [vmem:[#allocation2 + $0x169] sm:$0xff] }
  0xe0   : > { %v1048_v24 = vadd.f32 %v1819_v44, %v1012_v23  ;;  %v783_v50 = vadd.f32 %v751_v8, %v718_v3  ;;  %v687_v32 = vmul.f32 %v1565_v15, %v2244_v41  ;;  %v522_v52 = vmul.f32 %v1570_v19, %v2287_v34 }
  0xe1   : > { %v1013_v53 = vadd.f32 %v981_v22, %v948_v7  ;;  %v654_v47 = vadd.f32 %v622_v1, %v553_v59  ;;  %v489_v43 = vadd.f32 %v457_v10, %v392_v12  ;;  %v623_v17 = vmul.f32 %v1563_v14, %v1788_v39  ;;  %v2347_v1 = vld [vmem:[#allocation2 + $0x170] sm:$0xff] }
  0xe2   : > { %1080 = vst [vmem:[%s1864_s17 + $0xa8] sm:$0xff] %v1048_v24  ;;  %v884_v63 = vadd.f32 %v852_v6, %v783_v50  ;;  %v982_v5 = vmul.f32 %v1589_v28, %v2296_v31  ;;  %v752_v0 = vmul.f32 %v1567_v16, %v2298_v45  ;;  %v853_v57 = vmul.f32 %v1572_v20, %v2224_v62 }
  0xe3   : > { %v1049_v25 = vadd.f32 %v1819_v44, %v1013_v53  ;;  %v719_v35 = vadd.f32 %v687_v32, %v654_v47  ;;  %v554_v11 = vadd.f32 %v522_v52, %v489_v43  ;;  %v393_v39 = vmul.f32 %v1553_v9, %v2215_v18  ;;  %v362_v43 = vld [vmem:[#allocation2 + $0x180] sm:$0xff] }
  0xe4   : > { %v949_v61 = vadd.f32 %v917_v60, %v884_v63  ;;  %v918_v30 = vmul.f32 %v1574_v21, %v2263_v4  ;;  %v983_v33 = vmul.f32 %v1589_v28, %v2309_v46  ;;  %v458_v62 = vmul.f32 %v1561_v13, %v2265_v27  ;;  %v2369_v63 = vld [vmem:[#allocation2 + $0x16a] sm:$0xff] }
  0xe5   : > { %1081 = vst [vmem:[%s1864_s17 + $0xb0] sm:$0xff] %v1049_v25  ;;  %v784_v36 = vadd.f32 %v752_v0, %v719_v35  ;;  %v655_v58 = vadd.f32 %v623_v17, %v554_v11  ;;  %v688_v29 = vmul.f32 %v1565_v15, %v2274_v55  ;;  %v753_v42 = vmul.f32 %v1567_v16, %v2319_v51  ;;  %v2371_v0 = vld [vmem:[#allocation2 + $0x171] sm:$0xff] }
  0xe6   : > { %v1014_v18 = vadd.f32 %v982_v5, %v949_v61  ;;  %v854_v38 = vmul.f32 %v1572_v20, %v2242_v54  ;;  %v490_v22 = vadd.f32 %v458_v62, %v393_v39  ;;  %v523_v48 = vmul.f32 %v1570_v19, %v2322_v56 }
  0xe7   : > { %v885_v37 = vadd.f32 %v853_v57, %v784_v36  ;;  %v720_v23 = vadd.f32 %v688_v29, %v655_v58  ;;  %v919_v40 = vmul.f32 %v1574_v21, %v2296_v31  ;;  %v394_v3 = vmul.f32 %v1553_v9, %v2239_v2 }
  0xe8   : > { %v1050_v8 = vadd.f32 %v1819_v44, %v1014_v18  ;;  %v555_v54 = vadd.f32 %v523_v48, %v490_v22  ;;  %v624_v6 = vmul.f32 %v1563_v14, %v2244_v41  ;;  %v459_v12 = vmul.f32 %v1561_v13, %v2287_v34  ;;  %v2390_v18 = vld [vmem:[#allocation2 + $0x172] sm:$0xff]  ;;  %v593_v22 = vld [vmem:[#allocation2 + $0x181] sm:$0xff] }
  0xe9   : > { %v950_v24 = vadd.f32 %v918_v30, %v885_v37  ;;  %v785_v7 = vadd.f32 %v753_v42, %v720_v23  ;;  %v984_v59 = vmul.f32 %v1589_v28, %v2337_v49  ;;  %v689_v10 = vmul.f32 %v1565_v15, %v2298_v45  ;;  %v363_v37 = vld [vmem:[#allocation2 + $0x188] sm:$0xff] }
  0xea   : > { %1082 = vst [vmem:[%s1864_s17 + $0xb8] sm:$0xff] %v1050_v8  ;;  %v656_v50 = vadd.f32 %v624_v6, %v555_v54  ;;  %v754_v2 = vmul.f32 %v1567_v16, %v2345_v26  ;;  %v491_v60 = vadd.f32 %v459_v12, %v394_v3  ;;  %v524_v41 = vmul.f32 %v1570_v19, %v2347_v1 }
  0xeb   : > { %v1015_v32 = vadd.f32 %v983_v33, %v950_v24  ;;  %v886_v52 = vadd.f32 %v854_v38, %v785_v7  ;;  %v855_v53 = vmul.f32 %v1572_v20, %v2263_v4  ;;  %v625_v47 = vmul.f32 %v1563_v14, %v2274_v55 }
  0xec   : > { %v721_v17 = vadd.f32 %v689_v10, %v656_v50  ;;  %v556_v5 = vadd.f32 %v524_v41, %v491_v60  ;;  %v395_v57 = vmul.f32 %v1553_v9, %v2265_v27  ;;  %v460_v25 = vmul.f32 %v1561_v13, %v2322_v56  ;;  %v594_v41 = vld [vmem:[#allocation2 + $0x189] sm:$0xff] }
  0xed   : > { %v1051_v35 = vadd.f32 %v1819_v44, %v1015_v32  ;;  %v951_v4 = vadd.f32 %v919_v40, %v886_v52  ;;  %v920_v55 = vmul.f32 %v1574_v21, %v2309_v46  ;;  %v690_v11 = vmul.f32 %v1565_v15, %v2319_v51 }
  0xee   : > { %v786_v39 = vadd.f32 %v754_v2, %v721_v17  ;;  %v657_v61 = vadd.f32 %v625_v47, %v556_v5  ;;  %v492_v30 = vadd.f32 %v460_v25, %v395_v57  ;;  %v525_v33 = vmul.f32 %v1570_v19, %v362_v43  ;;  %v824_v2 = vld [vmem:[#allocation2 + $0x182] sm:$0xff]  ;;  %v2418_v47 = vld [vmem:[%s2499_s2] ss:$0 sm:$0xff] }
  0xef   : > { %1083 = vst [vmem:[%s1864_s17 + $0xc0] sm:$0xff] %v1051_v35  ;;  %v1016_v62 = vadd.f32 %v984_v59, %v951_v4  ;;  %v985_v27 = vmul.f32 %v1589_v28, %v2369_v63  ;;  %v755_v36 = vmul.f32 %v1567_v16, %v2371_v0  ;;  %v856_v58 = vmul.f32 %v1572_v20, %v2296_v31  ;;  %v1274_v57 = vld [vmem:[#allocation2] sm:$0xff] }
  0xf0   : > { %v887_v29 = vadd.f32 %v855_v53, %v786_v39  ;;  %v722_v42 = vadd.f32 %v690_v11, %v657_v61  ;;  %v557_v38 = vadd.f32 %v525_v33, %v492_v30  ;;  %v626_v48 = vmul.f32 %v1563_v14, %v2298_v45  ;;  %v595_v61 = vld [vmem:[#allocation2 + $0x199] sm:$0xff] }
  0xf1   : > { %v1052_v23 = vadd.f32 %v1819_v44, %v1016_v62  ;;  %v921_v40 = vmul.f32 %v1574_v21, %v2337_v49  ;;  %v396_v3 = vmul.f32 %v1553_v9, %v2287_v34  ;;  %v461_v31 = vmul.f32 %v1561_v13, %v2347_v1 }
  0xf2   : > { %v952_v8 = vadd.f32 %v920_v55, %v887_v29  ;;  %v787_v54 = vadd.f32 %v755_v36, %v722_v42  ;;  %v658_v6 = vadd.f32 %v626_v48, %v557_v38  ;;  %v691_v12 = vmul.f32 %v1565_v15, %v2345_v26 }
  0xf3   : > { %1084 = vst [vmem:[%s1864_s17 + $0xc8] sm:$0xff] %v1052_v23  ;;  %v986_v45 = vmul.f32 %v1589_v28, %v2390_v18  ;;  %v756_v44 = vmul.f32 %v1567_v16, %v593_v22  ;;  %v493_v24 = vadd.f32 %v461_v31, %v396_v3  ;;  %v526_v7 = vmul.f32 %v1570_v19, %v363_v37 }
  0xf4   : > { %v1017_v59 = vadd.f32 %v985_v27, %v952_v8  ;;  %v888_v34 = vadd.f32 %v856_v58, %v787_v54  ;;  %v723_v10 = vadd.f32 %v691_v12, %v658_v6  ;;  %v857_v50 = vmul.f32 %v1572_v20, %v2309_v46  ;;  %v596_v54 = vld [vmem:[#allocation2 + $0x1a1] sm:$0xff] }
  0xf5   : > { %v558_v60 = vadd.f32 %v526_v7, %v493_v24  ;;  %v627_v32 = vmul.f32 %v1563_v14, %v2319_v51  ;;  %v397_v52 = vmul.f32 %v1553_v9, %v2322_v56  ;;  %v462_v53 = vmul.f32 %v1561_v13, %v362_v43 }
  0xf6   : > { %v1053_v17 = vadd.f32 %v2418_v47, %v1017_v59  ;;  %v953_v46 = vadd.f32 %v921_v40, %v888_v34  ;;  %v788_v5 = vadd.f32 %v756_v44, %v723_v10  ;;  %v527_v25 = vmul.f32 %v1274_v57, %v1570_v19  ;;  %v825_v40 = vld [vmem:[#allocation2 + $0x18a] sm:$0xff] }
  0xf7   : > { %v922_v51 = vmul.f32 %v1574_v21, %v2369_v63  ;;  %v659_v35 = vadd.f32 %v627_v32, %v558_v60  ;;  %v692_v56 = vmul.f32 %v1565_v15, %v2371_v0  ;;  %v494_v43 = vadd.f32 %v462_v53, %v397_v52 }
  0xf8   : > { %1085 = vst [vmem:[%s1864_s17 + $0xd0] sm:$0xff] %v1053_v17  ;;  %v1018_v4 = vadd.f32 %v986_v45, %v953_v46  ;;  %v889_v55 = vadd.f32 %v857_v50, %v788_v5  ;;  %v987_v11 = vmul.f32 %v1589_v28, %v824_v2  ;;  %v757_v39 = vmul.f32 %v1567_v16, %v594_v41  ;;  %v826_v45 = vld [vmem:[#allocation2 + $0x19a] sm:$0xff] }
  0xf9   : > { %v724_v30 = vadd.f32 %v692_v56, %v659_v35  ;;  %v858_v19 = vmul.f32 %v1572_v20, %v2337_v49  ;;  %v559_v33 = vadd.f32 %v527_v25, %v494_v43  ;;  %v628_v62 = vmul.f32 %v1563_v14, %v2345_v26 }
  0xfa   : > { %v1054_v27 = vadd.f32 %v2418_v47, %v1018_v4  ;;  %v954_v36 = vadd.f32 %v922_v51, %v889_v55  ;;  %v398_v58 = vmul.f32 %v1553_v9, %v2347_v1  ;;  %v463_v29 = vmul.f32 %v1561_v13, %v363_v37 }
  0xfb   : > { %v789_v42 = vadd.f32 %v757_v39, %v724_v30  ;;  %v660_v38 = vadd.f32 %v628_v62, %v559_v33  ;;  %v693_v48 = vmul.f32 %v1565_v15, %v593_v22  ;;  %v758_v23 = vmul.f32 %v1567_v16, %v595_v61 }
  0xfc   : > { %1086 = vst [vmem:[%s1864_s17 + $0xd8] sm:$0xff] %v1054_v27  ;;  %v1019_v49 = vadd.f32 %v987_v11, %v954_v36  ;;  %v495_v3 = vadd.f32 %v463_v29, %v398_v58  ;;  %v923_v31 = vmul.f32 %v1574_v21, %v2390_v18  ;;  %v629_v1 = vmul.f32 %v1563_v14, %v2371_v0 }
  0xfd   : > { %v890_v26 = vadd.f32 %v858_v19, %v789_v42  ;;  %v725_v8 = vadd.f32 %v693_v48, %v660_v38  ;;  %v988_v37 = vmul.f32 %v1589_v28, %v825_v40  ;;  %v859_v12 = vmul.f32 %v1572_v20, %v2369_v63 }
  0xfe   : > { %v1055_v9 = vadd.f32 %v2418_v47, %v1019_v49  ;;  %v560_v13 = vadd.f32 %v527_v25, %v495_v3  ;;  %v694_v24 = vmul.f32 %v1565_v15, %v594_v41  ;;  %v759_v7 = vmul.f32 %v1567_v16, %v596_v54  ;;  %v827_v16 = vld [vmem:[#allocation2 + $0x1a2] sm:$0xff] }
  0xff   : > { %v955_v22 = vadd.f32 %v923_v31, %v890_v26  ;;  %v790_v6 = vadd.f32 %v758_v23, %v725_v8  ;;  %v924_v10 = vmul.f32 %v1574_v21, %v824_v2  ;;  %v989_v63 = vmul.f32 %v1589_v28, %v826_v45 }
 0x100   : > { %1087 = vst [vmem:[%s1864_s17 + $0xe0] sm:$0xff] %v1055_v9  ;;  %v661_v44 = vadd.f32 %v629_v1, %v560_v13  ;;  %v860_v32 = vmul.f32 %v1572_v20, %v2390_v18  ;;  %v925_v41 = vmul.f32 %v1574_v21, %v825_v40  ;;  %v990_v17 = vmul.f32 %v1589_v28, %v827_v16 }
 0x101   : > { %v1020_v59 = vadd.f32 %v988_v37, %v955_v22  ;;  %v891_v34 = vadd.f32 %v859_v12, %v790_v6 }
 0x102   : > { %v726_v14 = vadd.f32 %v694_v24, %v661_v44 }
 0x103   : > { %v1056_v0 = vadd.f32 %v2418_v47, %v1020_v59  ;;  %v956_v50 = vadd.f32 %v924_v10, %v891_v34 }
 0x104   : > { %v791_v60 = vadd.f32 %v759_v7, %v726_v14 }
 0x105   : > { %1088 = vst [vmem:[%s1864_s17 + $0xe8] sm:$0xff] %v1056_v0  ;;  %v1021_v15 = vadd.f32 %v989_v63, %v956_v50 }
 0x106   : > { %v892_v2 = vadd.f32 %v860_v32, %v791_v60 }
 0x107   : > { %v1057_v52 = vadd.f32 %v2418_v47, %v1021_v15 }
 0x108   : > { %v957_v53 = vadd.f32 %v925_v41, %v892_v2 }
 0x109   : > { %1089 = vst [vmem:[%s1864_s17 + $0xf0] sm:$0xff] %v1057_v52 }
 0x10a   : > { %v1022_v20 = vadd.f32 %v990_v17, %v957_v53 }
 0x10c   : > { %v1058_v18 = vadd.f32 %v2418_v47, %v1022_v20 }
 0x10e   : > { %1090 = vst [vmem:[%s1864_s17 + $0xf8] sm:$0xff] %v1058_v18 }
 0x10f   : > { %1362 = shalt.err (!%p1359_p10)
}
 0x110   : > { %s1413_s10 = smov 128   ;;  %s1414_s23 = smov 8  }
 0x111   : > { %1214 = dma.vmem_to_hbm [thread:$0]  (%p1502_p7), %s1105_s16, 4096, %s1107_s30, %s1092_s7, %s1413_s10, %s1413_s10, %s1414_s23  }
 0x112 PF: > { %s1121_s17 = sand.u32 1, %s1393_s12   ;;  %p2545_p12 = scmp.ge.s32.totalorder %s1405_s15, 2 }
 0x113   : > { %s1122_s21 = scalar_lea.sflag [#allocation5], %s1121_s17 }
 0x114   : > { %p1225_p13 = pnand %p2545_p12, %p1470_p6 }
 0x116   : > { %p1226_p0 = pneg %p1225_p13 }
 0x118   : > { %1388 = dma.done.wait (%p1226_p0), %s1122_s21, 4096  }
 0x119   : > { %1390 = vsyncadd (%p1226_p0), %s1122_s21, 4294963200  ;;  %p17_p3 = scmp.ge.s32.totalorder %s1488_s26, 4   ;;  %s2546_s12 = smov %s1397_s13 }
 0x11a   : > { %s2547_s13 = smov %s1401_s14  ;;  %s2548_s14 = smov %s1498_s4 }
 0x11b   : > { %s2549_s15 = smov %s1488_s26  ;;  %19 = sbr.rel (!%p17_p3) target bundleno = 6 (0x6), region = 82 }
 0x120   :  { %1128 = vsyncpa [#allocation4], 1 }
 0x121   :  { %1130 = vsyncpa [#allocation4 + $0x1], 1 }
 0x122   :  { %1131 = vsyncpa [#allocation7], 1 }
 0x123   :  { %1132 = vsyncpa [#allocation5], 1 }
 0x124   :  { %1134 = vsyncpa [#allocation5 + $0x1], 1 }

</bundles_post_ra>
